<compile_context>
chip_gen: v5e
topology: v5e:2x2
jax: 0.10.0
libtpu: 0.0.40
codegen_flags: <defaults>
</compile_context>

<pallas_src>
import functools

import jax
import jax.numpy as jnp
import numpy as np
from jax import lax
from jax.experimental import pallas as pl
from jax.experimental.pallas import tpu as pltpu


# -----------------------------------------------------------------------------
# Pallas kernel
# -----------------------------------------------------------------------------
def _fusedmax_kernel(x_hbm, len_smem, lens_ref, o_ref, x_smem, y_ref, dma_sem,
                     *, alpha, rows, max_n):
    """One grid step processes `rows` consecutive batch rows.

    x_hbm:    (B_pad, N) f32, memory_space=ANY (this block is DMA'd to SMEM)
    len_smem: (B_pad,)   i32 SMEM  -- valid length per row (scalar access)
    lens_ref: (rows, 1)  i32 VMEM  -- same lengths, vector form for masking
    o_ref:    (rows, N)  f32 VMEM  -- output block
    x_smem:   (rows, N)  f32 SMEM scratch -- rows of x (scalar random access)
    y_ref:    (rows, N)  f32 VMEM scratch -- TV-prox output per row
    dma_sem:  DMA semaphore for the block copy
    """
    R, N = rows, max_n
    lam = jnp.float32(alpha)
    b = pl.program_id(0)
    r0 = pl.multiple_of(b * R, R)

    # Bring this block of rows into SMEM (Condat's prox reads x[k+1]
    # data-dependently, which belongs on the scalar path).
    cp = pltpu.make_async_copy(x_hbm.at[pl.ds(r0, R)], x_smem, dma_sem)
    cp.start()
    cp.wait()

    # Zero the prox scratch (positions >= length stay 0; robust against stale VMEM).
    y_ref[...] = jnp.zeros_like(y_ref)

    idx_row = lax.broadcasted_iota(jnp.int32, (1, N), 1)   # [[0, 1, ..., N-1]]

    # ------------------------------------------------------------------
    # Stage 1: 1-D TV prox (Condat's direct algorithm), one row at a time.
    # Scalar state lives in sregs; segment flushes are single masked vector
    # writes to y_ref executed only when a flush actually happens.
    # ------------------------------------------------------------------
    def row_body(r, carry):
        n_row = len_smem[r0 + r]
        x0 = x_smem[r, 0]
        # Safety cap only -- the loop exits via `done` in ~O(n_row) steps.
        max_iters = (n_row + 1) * (n_row + 1) + 2

        def cond_fn(st):
            done, it = st[8], st[9]
            return (done == 0) & (it < max_iters) & (n_row > 0)

        def body_fn(st):
            k, k0, kminus, kplus, vmin, vmax, umin, umax, done, it = st
            at_end = k == n_row - 1

            nxt = jnp.maximum(jnp.minimum(k + 1, n_row - 1), 0)
            xk1 = x_smem[r, nxt]
            umin_m = umin + xk1 - vmin
            umax_m = umax + xk1 - vmax

            # Disjoint, exhaustive branch predicates (mirror Condat's control flow).
            A = at_end & (umin < 0.0)                          # boundary, negative jump
            B = at_end & ~(umin < 0.0) & (umax > 0.0)          # boundary, positive jump
            C = at_end & ~(umin < 0.0) & ~(umax > 0.0)         # boundary, final flush
            D = ~at_end & (umin_m < -lam)                      # negative jump
            E = ~at_end & ~(umin_m < -lam) & (umax_m > lam)    # positive jump
            F = ~at_end & ~(umin_m < -lam) & ~(umax_m > lam)   # advance (hot path)

            AD = A | D
            BE = B | E
            last_minus = jnp.maximum(k0, kminus)
            last_plus = jnp.maximum(k0, kplus)

            seg_c = (k - k0 + 1).astype(jnp.float32)
            wval = jnp.where(C, vmin + umin / seg_c, jnp.where(AD, vmin, vmax))
            wlast = jnp.where(C, k, jnp.where(AD, last_minus, last_plus))
            do_write = A | B | C | D | E

            # Vector work only on (rare) segment flushes; the advance branch
            # touches sregs only.
            @pl.when(do_write)
            def _flush():
                wr = (idx_row >= k0) & (idx_row <= wlast)
                row_old = y_ref[pl.ds(r, 1), :]
                y_ref[pl.ds(r, 1), :] = jnp.where(wr, wval, row_old)

            jump = A | B | D | E
            new_k0 = jnp.where(jump, jnp.where(AD, last_minus, last_plus) + 1, k0)
            x_new = x_smem[r, jnp.maximum(jnp.minimum(new_k0, n_row - 1), 0)]

            new_k = jnp.where(jump, new_k0, jnp.where(F, k + 1, k))
            new_kminus = jnp.where(A | D | E, new_k0,
                                   jnp.where(F & (umin_m >= lam), k + 1, kminus))
            new_kplus = jnp.where(B | D | E, new_k0,
                                  jnp.where(F & (umax_m <= -lam), k + 1, kplus))
            seg_f = (k + 1 - k0 + 1).astype(jnp.float32)
            new_vmin = jnp.where(AD, x_new,
                                 jnp.where(E, x_new - 2.0 * lam,
                                           jnp.where(F & (umin_m >= lam),
                                                     vmin + (umin_m - lam) / seg_f,
                                                     vmin)))
            new_vmax = jnp.where(BE, x_new,
                                 jnp.where(D, x_new + 2.0 * lam,
                                           jnp.where(F & (umax_m <= -lam),
                                                     vmax + (umax_m + lam) / seg_f,
                                                     vmax)))
            new_umin = jnp.where(A | D | E, lam,
                                 jnp.where(B, x_new - lam - vmin,
                                           jnp.where(F, jnp.minimum(umin_m, lam), umin)))
            new_umax = jnp.where(B | D | E, -lam,
                                 jnp.where(A, x_new + lam - vmax,
                                           jnp.where(F, jnp.maximum(umax_m, -lam), umax)))
            new_done = jnp.where(C, jnp.int32(1), done)
            return (new_k, new_k0, new_kminus, new_kplus,
                    new_vmin, new_vmax, new_umin, new_umax,
                    new_done, it + jnp.int32(1))

        init = (jnp.int32(0), jnp.int32(0), jnp.int32(0), jnp.int32(0),
                x0 - lam, x0 + lam, lam, -lam,
                jnp.int32(0), jnp.int32(0))
        lax.while_loop(cond_fn, body_fn, init)
        return carry

    lax.fori_loop(0, R, row_body, jnp.int32(0))

    # ------------------------------------------------------------------
    # Stage 2: sparsemax via O(N) bisection on tau (sum(relu(y - tau)) == 1),
    # vectorized over the whole (R, N) block, plus one exact refinement step.
    # ------------------------------------------------------------------
    y = y_ref[...]                                           # (R, N)
    lens = lens_ref[...]                                     # (R, 1) i32
    col = lax.broadcasted_iota(jnp.int32, (R, N), 1)
    valid = col < lens                                       # (R, N) bool

    neg_big = jnp.float32(-3.0e38)
    ymax = jnp.max(jnp.where(valid, y, neg_big), axis=1, keepdims=True)   # (R, 1)
    ymax = jnp.where(lens > 0, ymax, 0.0)                    # harmless value for empty rows
    lo0 = ymax - 1.0                                         # f(lo0) >= 1
    hi0 = ymax                                               # f(hi0) = -1 < 1

    def bis_body(_, lohi):
        lo, hi = lohi
        mid = 0.5 * (lo + hi)
        f = jnp.sum(jnp.where(valid, jnp.maximum(y - mid, 0.0), 0.0),
                    axis=1, keepdims=True)
        ge = f >= 1.0
        return jnp.where(ge, mid, lo), jnp.where(ge, hi, mid)

    lo, _ = lax.fori_loop(0, 25, bis_body, (lo0, hi0), unroll=True)

    # Exact refinement: support determined by the bracketed threshold.
    support = valid & (y > lo)
    k = jnp.sum(jnp.where(support, 1.0, 0.0), axis=1, keepdims=True)      # (R, 1)
    s = jnp.sum(jnp.where(support, y, 0.0), axis=1, keepdims=True)        # (R, 1)
    tau = (s - 1.0) / jnp.maximum(k, 1.0)
    tau = jnp.where(k > 0.0, tau, 0.0)                       # empty rows: finite tau

    o_ref[...] = jnp.where(valid, jnp.maximum(y - tau, 0.0), 0.0)


# -----------------------------------------------------------------------------
# Wrapper (mirrors torchsparseattn.Fusedmax.forward)
# -----------------------------------------------------------------------------
def fusedmax(x, alpha=1.0, lengths=None, rows_per_block=8):
    x = jnp.asarray(x, dtype=jnp.float32)
    B, N = x.shape
    if lengths is None:
        lengths = jnp.full((B,), N, dtype=jnp.int32)
    else:
        lengths = jnp.asarray(lengths, dtype=jnp.int32)

    R = int(rows_per_block)
    B_pad = ((B + R - 1) // R) * R
    if B_pad != B:
        x = jnp.pad(x, ((0, B_pad - B), (0, 0)))
        lengths = jnp.pad(lengths, (0, B_pad - B))   # padded rows -> length 0 -> zeros
    lengths_col = lengths.reshape(B_pad, 1)

    kernel = functools.partial(_fusedmax_kernel, alpha=float(alpha),
                               rows=R, max_n=N)
    out = pl.pallas_call(
        kernel,
        out_shape=jax.ShapeDtypeStruct((B_pad, N), jnp.float32),
        grid=(B_pad // R,),
        in_specs=[
            pl.BlockSpec(memory_space=pl.ANY),                   # x stays in HBM
            pl.BlockSpec(memory_space=pltpu.MemorySpace.SMEM),   # lengths (scalar access)
            pl.BlockSpec((R, 1), lambda b: (b, 0)),              # lengths as (R,1) VMEM block
        ],
        # Lane-dense multi-row output block; single unmasked store per step.
        out_specs=pl.BlockSpec((R, N), lambda b: (b, 0)),
        scratch_shapes=[
            pltpu.SMEM((R, N), jnp.float32),    # x rows for scalar random access
            pltpu.VMEM((R, N), jnp.float32),    # TV-prox output per row
            pltpu.SemaphoreType.DMA,            # block-copy semaphore
        ],
        compiler_params=pltpu.CompilerParams(
            dimension_semantics=("parallel",)),   # row blocks independent -> megacore
    )(x, lengths, lengths_col)
    return out[:B]


class Fusedmax:
    """JAX/Pallas counterpart of the PyTorch Fusedmax module (forward only)."""

    def __init__(self, alpha=1):
        self.alpha = alpha

    def __call__(self, x, lengths=None):
        return fusedmax(x, self.alpha, lengths)


# -----------------------------------------------------------------------------
# Pure-numpy reference (Condat TV prox + sort-based sparsemax) for verification
# -----------------------------------------------------------------------------
def _prox_tv1d_ref(x, lam):
    x = np.asarray(x, dtype=np.float64)
    n = x.shape[0]
    y = np.empty(n, dtype=np.float64)
    k = 0; k0 = 0; kminus = 0; kplus = 0
    umin = lam; umax = -lam
    vmin = x[0] - lam; vmax = x[0] + lam
    while True:
        while k == n - 1:
            if umin < 0.0:
                while True:
                    y[k0] = vmin; k0 += 1
                    if k0 > kminus:
                        break
                k = k0; kminus = k0
                vmin = x[min(k0, n - 1)]
                umax = vmin + lam - vmax
                umin = lam
            elif umax > 0.0:
                while True:
                    y[k0] = vmax; k0 += 1
                    if k0 > kplus:
                        break
                k = k0; kplus = k0
                vmax = x[min(k0, n - 1)]
                umin = vmax - lam - vmin
                umax = -lam
            else:
                vmin += umin / (k - k0 + 1)
                while True:
                    y[k0] = vmin; k0 += 1
                    if k0 > k:
                        break
                return y
        umin += x[k + 1] - vmin
        if umin < -lam:
            while True:
                y[k0] = vmin; k0 += 1
                if k0 > kminus:
                    break
            k = k0; kminus = k0; kplus = k0
            vmin = x[min(k0, n - 1)]
            vmax = vmin + 2.0 * lam
            umin = lam; umax = -lam
        else:
            umax += x[k + 1] - vmax
            if umax > lam:
                while True:
                    y[k0] = vmax; k0 += 1
                    if k0 > kplus:
                        break
                k = k0; kminus = k0; kplus = k0
                vmax = x[min(k0, n - 1)]
                vmin = vmax - 2.0 * lam
                umin = lam; umax = -lam
            else:
                k += 1
                if umin >= lam:
                    kminus = k
                    vmin += (umin - lam) / (k - k0 + 1)
                    umin = lam
                if umax <= -lam:
                    kplus = k
                    vmax += (umax + lam) / (k - k0 + 1)
                    umax = -lam


def _sparsemax_ref(z):
    z = np.asarray(z, dtype=np.float64)
    zs = np.sort(z)[::-1]
    css = np.cumsum(zs)
    ks = np.arange(1, z.shape[0] + 1)
    support = 1.0 + ks * zs > css
    k = int(ks[support][-1])
    tau = (css[k - 1] - 1.0) / k
    return np.maximum(z - tau, 0.0)


def _fusedmax_ref(x, alpha=1.0, lengths=None):
    x = np.asarray(x, dtype=np.float64)
    B, N = x.shape
    if lengths is None:
        lengths = [N] * B
    out = np.zeros((B, N), dtype=np.float64)
    for b in range(B):
        L = int(lengths[b])
        if L <= 0:
            continue
        y = _prox_tv1d_ref(x[b, :L].copy(), float(alpha))
        out[b, :L] = _sparsemax_ref(y)
    return out


# -----------------------------------------------------------------------------
# Demo / self-check
# -----------------------------------------------------------------------------
if __name__ == "__main__":
    key = jax.random.PRNGKey(0)
    B, N = 2, 8
    x = 2.0 * jax.random.normal(key, (B, N), dtype=jnp.float32)
    alpha = 1.0

    model = Fusedmax(alpha=alpha)

    # Full-length rows (lengths=None).
    out = jax.block_until_ready(model(x))
    ref = _fusedmax_ref(np.asarray(x), alpha, None)
    np.testing.assert_allclose(np.asarray(out), ref, atol=1e-4, rtol=1e-4)

    # Variable-length rows.
    lengths = jnp.array([N, 5], dtype=jnp.int32)
    out_l = jax.block_until_ready(model(x, lengths))
    ref_l = _fusedmax_ref(np.asarray(x), alpha, np.asarray(lengths))
    np.testing.assert_allclose(np.asarray(out_l), ref_l, atol=1e-4, rtol=1e-4)

    # Larger / adversarial rows: piecewise-constant, all-ties, length 1 and 0,
    # and a batch that is not a multiple of the 8-row block (exercises padding).
    B2, N2 = 5, 50
    x2 = jax.random.normal(jax.random.PRNGKey(1), (B2, N2), dtype=jnp.float32)
    x2 = x2.at[1].set(jnp.repeat(
        jnp.array([0.5, -0.25, 1.5, 0.0, 0.5], dtype=jnp.float32), 10))
    x2 = x2.at[2].set(jnp.zeros((N2,), jnp.float32))
    lengths2 = jnp.array([N2, N2, 37, 1, 0], dtype=jnp.int32)
    out2 = jax.block_until_ready(fusedmax(x2, 0.5, lengths2))
    ref2 = _fusedmax_ref(np.asarray(x2), 0.5, np.asarray(lengths2))
    np.testing.assert_allclose(np.asarray(out2), ref2, atol=1e-4, rtol=1e-4)

    print("KERNEL_OK")
</pallas_src>

<mosaic_0001>
module attributes {stable_mosaic.version = 11 : i64} {
  func.func @_fusedmax_kernel(%arg0: i32, %arg1: memref<8x8xf32, #tpu.memory_space<any>>, %arg2: memref<8xi32, #tpu.memory_space<smem>>, %arg3: memref<8x1xi32, #tpu.memory_space<vmem>>, %arg4: memref<8x8xf32, #tpu.memory_space<vmem>>, %arg5: memref<8x8xf32, #tpu.memory_space<smem>>, %arg6: memref<8x8xf32, #tpu.memory_space<vmem>>, %arg7: memref<!tpu.dma_semaphore, #tpu.memory_space<semaphore_mem>>) attributes {dimension_semantics = [#tpu.dimension_semantics<parallel>], iteration_bounds = array<i64: 1>, scalar_prefetch = 0 : i64, scratch_operands = 3 : i64, tpu.core_type = #tpu.core_type<tc>, window_params = [{}, {transform_indices = @transform_1, window_bounds = array<i64: 8>}, {transform_indices = @transform_2, window_bounds = array<i64: 8, 1>}, {transform_indices = @transform_3, window_bounds = array<i64: 8, 8>}]} {
    %c8_i32 = arith.constant 8 : i32
    %0 = arith.muli %arg0, %c8_i32 : i32
    %1 = tpu.assume_multiple %0, 8 : i32
    %c0_i32 = arith.constant 0 : i32
    %2 = tpu.memref_slice %arg1[%1, %c0_i32] : memref<8x8xf32, #tpu.memory_space<any>> -> memref<8x8xf32, #tpu.memory_space<any>>
    tpu.enqueue_dma source(%2 : memref<8x8xf32, #tpu.memory_space<any>>) target(%arg5 : memref<8x8xf32, #tpu.memory_space<smem>>) target_semaphore(%arg7 : memref<!tpu.dma_semaphore, #tpu.memory_space<semaphore_mem>>)
    %c0_i32_0 = arith.constant 0 : i32
    %3 = tpu.memref_slice %arg1[%1, %c0_i32_0] : memref<8x8xf32, #tpu.memory_space<any>> -> memref<8x8xf32, #tpu.memory_space<any>>
    tpu.wait_dma2 semaphore(%arg7 : memref<!tpu.dma_semaphore, #tpu.memory_space<semaphore_mem>>) src(%3 : memref<8x8xf32, #tpu.memory_space<any>>) dst(%arg5 : memref<8x8xf32, #tpu.memory_space<smem>>)
    %cst = arith.constant 0.000000e+00 : f32
    %4 = vector.broadcast %cst : f32 to vector<8x8xf32>
    %c0 = arith.constant 0 : index
    %c0_1 = arith.constant 0 : index
    %5 = vector.load %arg6[%c0, %c0_1] : memref<8x8xf32, #tpu.memory_space<vmem>>, vector<8x8xf32>
    tpu.vector_store %arg6[%c0, %c0_1], %4 {strides = array<i32>} : memref<8x8xf32, #tpu.memory_space<vmem>>, vector<8x8xf32>,
    %6 = tpu.iota {dimensions = array<i32: 1>} : vector<1x8xi32>
    %cst_2 = arith.constant 1.000000e+00 : f32
    %c0_i32_3 = arith.constant 0 : i32
    %c8_i32_4 = arith.constant 8 : i32
    %7 = arith.addi %c0_i32_3, %c8_i32_4 : i32
    %c1_i32 = arith.constant 1 : i32
    scf.for %arg8 = %c0_i32_3 to %7 step %c1_i32  : i32 {
      %426 = arith.addi %1, %arg8 : i32
      %427 = arith.index_cast %426 : i32 to index
      %428 = memref.load %arg2[%427] : memref<8xi32, #tpu.memory_space<smem>>
      %429 = arith.index_cast %arg8 : i32 to index
      %c0_156 = arith.constant 0 : index
      %430 = memref.load %arg5[%429, %c0_156] : memref<8x8xf32, #tpu.memory_space<smem>>
      %c1_i32_157 = arith.constant 1 : i32
      %431 = arith.addi %428, %c1_i32_157 : i32
      %c1_i32_158 = arith.constant 1 : i32
      %432 = arith.addi %428, %c1_i32_158 : i32
      %433 = arith.muli %431, %432 : i32
      %c2_i32_159 = arith.constant 2 : i32
      %434 = arith.addi %433, %c2_i32_159 : i32
      %435 = arith.subf %430, %cst_2 : f32
      %436 = arith.addf %430, %cst_2 : f32
      %cst_160 = arith.constant 0.000000e+00 : f32
      %437 = arith.subf %cst_160, %cst_2 : f32
      %c0_i32_161 = arith.constant 0 : i32
      %c0_i32_162 = arith.constant 0 : i32
      %c0_i32_163 = arith.constant 0 : i32
      %c0_i32_164 = arith.constant 0 : i32
      %c0_i32_165 = arith.constant 0 : i32
      %c0_i32_166 = arith.constant 0 : i32
      %438:10 = scf.while (%arg9 = %c0_i32_161, %arg10 = %c0_i32_162, %arg11 = %c0_i32_163, %arg12 = %c0_i32_164, %arg13 = %435, %arg14 = %436, %arg15 = %cst_2, %arg16 = %437, %arg17 = %c0_i32_165, %arg18 = %c0_i32_166) : (i32, i32, i32, i32, f32, f32, f32, f32, i32, i32) -> (i32, i32, i32, i32, f32, f32, f32, f32, i32, i32) {
        %c0_i32_167 = arith.constant 0 : i32
        %439 = arith.cmpi eq, %arg17, %c0_i32_167 : i32
        %440 = arith.cmpi slt, %arg18, %434 : i32
        %441 = arith.andi %439, %440 : i1
        %c0_i32_168 = arith.constant 0 : i32
        %442 = arith.cmpi sgt, %428, %c0_i32_168 : i32
        %443 = arith.andi %441, %442 : i1
        scf.condition(%443) %arg9, %arg10, %arg11, %arg12, %arg13, %arg14, %arg15, %arg16, %arg17, %arg18 : i32, i32, i32, i32, f32, f32, f32, f32, i32, i32
      } do {
      ^bb0(%arg9: i32, %arg10: i32, %arg11: i32, %arg12: i32, %arg13: f32, %arg14: f32, %arg15: f32, %arg16: f32, %arg17: i32, %arg18: i32):
        %c1_i32_167 = arith.constant 1 : i32
        %439 = arith.subi %428, %c1_i32_167 : i32
        %440 = arith.cmpi eq, %arg9, %439 : i32
        %c1_i32_168 = arith.constant 1 : i32
        %441 = arith.addi %arg9, %c1_i32_168 : i32
        %c1_i32_169 = arith.constant 1 : i32
        %442 = arith.subi %428, %c1_i32_169 : i32
        %443 = arith.minsi %441, %442 : i32
        %c0_i32_170 = arith.constant 0 : i32
        %444 = arith.maxsi %443, %c0_i32_170 : i32
        %445 = arith.index_cast %arg8 : i32 to index
        %446 = arith.index_cast %444 : i32 to index
        %447 = memref.load %arg5[%445, %446] : memref<8x8xf32, #tpu.memory_space<smem>>
        %448 = arith.addf %arg15, %447 : f32
        %449 = arith.subf %448, %arg13 : f32
        %450 = arith.addf %arg16, %447 : f32
        %451 = arith.subf %450, %arg14 : f32
        %cst_171 = arith.constant 0.000000e+00 : f32
        %452 = arith.cmpf olt, %arg15, %cst_171 : f32
        %453 = arith.andi %440, %452 : i1
        %cst_172 = arith.constant 0.000000e+00 : f32
        %454 = arith.cmpf olt, %arg15, %cst_172 : f32
        %true = arith.constant true
        %455 = arith.xori %454, %true : i1
        %456 = arith.andi %440, %455 : i1
        %cst_173 = arith.constant 0.000000e+00 : f32
        %457 = arith.cmpf ogt, %arg16, %cst_173 : f32
        %458 = arith.andi %456, %457 : i1
        %cst_174 = arith.constant 0.000000e+00 : f32
        %459 = arith.cmpf olt, %arg15, %cst_174 : f32
        %true_175 = arith.constant true
        %460 = arith.xori %459, %true_175 : i1
        %461 = arith.andi %440, %460 : i1
        %cst_176 = arith.constant 0.000000e+00 : f32
        %462 = arith.cmpf ogt, %arg16, %cst_176 : f32
        %true_177 = arith.constant true
        %463 = arith.xori %462, %true_177 : i1
        %464 = arith.andi %461, %463 : i1
        %true_178 = arith.constant true
        %465 = arith.xori %440, %true_178 : i1
        %cst_179 = arith.constant 0.000000e+00 : f32
        %466 = arith.subf %cst_179, %cst_2 : f32
        %467 = arith.cmpf olt, %449, %466 : f32
        %468 = arith.andi %465, %467 : i1
        %true_180 = arith.constant true
        %469 = arith.xori %440, %true_180 : i1
        %cst_181 = arith.constant 0.000000e+00 : f32
        %470 = arith.subf %cst_181, %cst_2 : f32
        %471 = arith.cmpf olt, %449, %470 : f32
        %true_182 = arith.constant true
        %472 = arith.xori %471, %true_182 : i1
        %473 = arith.andi %469, %472 : i1
        %474 = arith.cmpf ogt, %451, %cst_2 : f32
        %475 = arith.andi %473, %474 : i1
        %true_183 = arith.constant true
        %476 = arith.xori %440, %true_183 : i1
        %cst_184 = arith.constant 0.000000e+00 : f32
        %477 = arith.subf %cst_184, %cst_2 : f32
        %478 = arith.cmpf olt, %449, %477 : f32
        %true_185 = arith.constant true
        %479 = arith.xori %478, %true_185 : i1
        %480 = arith.andi %476, %479 : i1
        %481 = arith.cmpf ogt, %451, %cst_2 : f32
        %true_186 = arith.constant true
        %482 = arith.xori %481, %true_186 : i1
        %483 = arith.andi %480, %482 : i1
        %484 = arith.ori %453, %468 : i1
        %485 = arith.ori %458, %475 : i1
        %486 = arith.maxsi %arg10, %arg11 : i32
        %487 = arith.maxsi %arg10, %arg12 : i32
        %488 = arith.subi %arg9, %arg10 : i32
        %c1_i32_187 = arith.constant 1 : i32
        %489 = arith.addi %488, %c1_i32_187 : i32
        %490 = arith.sitofp %489 : i32 to f32
        %491 = arith.divf %arg15, %490 : f32
        %492 = arith.addf %arg13, %491 : f32
        %493 = arith.select %484, %arg13, %arg14 : f32
        %494 = arith.select %464, %492, %493 : f32
        %495 = arith.select %484, %486, %487 : i32
        %496 = arith.select %464, %arg9, %495 : i32
        %497 = arith.ori %453, %458 : i1
        %498 = arith.ori %497, %464 : i1
        %499 = arith.ori %498, %468 : i1
        %500 = arith.ori %499, %475 : i1
        %501 = arith.extui %500 : i1 to i32
        %c0_i32_188 = arith.constant 0 : i32
        %502 = arith.cmpi ne, %501, %c0_i32_188 : i32
        scf.if %502 {
          %578 = vector.broadcast %arg10 : i32 to vector<1x8xi32>
          %579 = arith.cmpi sge, %6, %578 : vector<1x8xi32>
          %580 = vector.broadcast %496 : i32 to vector<1x8xi32>
          %581 = arith.cmpi sle, %6, %580 : vector<1x8xi32>
          %582 = arith.andi %579, %581 : vector<1x8xi1>
          %583 = arith.index_cast %arg8 : i32 to index
          %c0_205 = arith.constant 0 : index
          %584 = vector.load %arg6[%583, %c0_205] : memref<8x8xf32, #tpu.memory_space<vmem>>, vector<1x8xf32>
          %585 = vector.broadcast %494 : f32 to vector<1x8xf32>
          %586 = arith.select %582, %585, %584 : vector<1x8xi1>, vector<1x8xf32>
          %587 = arith.index_cast %arg8 : i32 to index
          %c0_206 = arith.constant 0 : index
          %588 = vector.load %arg6[%587, %c0_206] : memref<8x8xf32, #tpu.memory_space<vmem>>, vector<1x8xf32>
          tpu.vector_store %arg6[%587, %c0_206], %586 {strides = array<i32>} : memref<8x8xf32, #tpu.memory_space<vmem>>, vector<1x8xf32>,
        } else {
        }
        %503 = arith.ori %453, %458 : i1
        %504 = arith.ori %503, %468 : i1
        %505 = arith.ori %504, %475 : i1
        %506 = arith.select %484, %486, %487 : i32
        %c1_i32_189 = arith.constant 1 : i32
        %507 = arith.addi %506, %c1_i32_189 : i32
        %508 = arith.select %505, %507, %arg10 : i32
        %c1_i32_190 = arith.constant 1 : i32
        %509 = arith.subi %428, %c1_i32_190 : i32
        %510 = arith.minsi %508, %509 : i32
        %c0_i32_191 = arith.constant 0 : i32
        %511 = arith.maxsi %510, %c0_i32_191 : i32
        %512 = arith.index_cast %arg8 : i32 to index
        %513 = arith.index_cast %511 : i32 to index
        %514 = memref.load %arg5[%512, %513] : memref<8x8xf32, #tpu.memory_space<smem>>
        %c1_i32_192 = arith.constant 1 : i32
        %515 = arith.addi %arg9, %c1_i32_192 : i32
        %516 = arith.select %483, %515, %arg9 : i32
        %517 = arith.select %505, %508, %516 : i32
        %518 = arith.ori %453, %468 : i1
        %519 = arith.ori %518, %475 : i1
        %520 = arith.cmpf oge, %449, %cst_2 : f32
        %521 = arith.andi %483, %520 : i1
        %c1_i32_193 = arith.constant 1 : i32
        %522 = arith.addi %arg9, %c1_i32_193 : i32
        %523 = arith.select %521, %522, %arg11 : i32
        %524 = arith.select %519, %508, %523 : i32
        %525 = arith.ori %458, %468 : i1
        %526 = arith.ori %525, %475 : i1
        %cst_194 = arith.constant 0.000000e+00 : f32
        %527 = arith.subf %cst_194, %cst_2 : f32
        %528 = arith.cmpf ole, %451, %527 : f32
        %529 = arith.andi %483, %528 : i1
        %c1_i32_195 = arith.constant 1 : i32
        %530 = arith.addi %arg9, %c1_i32_195 : i32
        %531 = arith.select %529, %530, %arg12 : i32
        %532 = arith.select %526, %508, %531 : i32
        %c1_i32_196 = arith.constant 1 : i32
        %533 = arith.addi %arg9, %c1_i32_196 : i32
        %534 = arith.subi %533, %arg10 : i32
        %c1_i32_197 = arith.constant 1 : i32
        %535 = arith.addi %534, %c1_i32_197 : i32
        %536 = arith.sitofp %535 : i32 to f32
        %cst_198 = arith.constant 2.000000e+00 : f32
        %537 = arith.mulf %cst_198, %cst_2 : f32
        %538 = arith.subf %514, %537 : f32
        %539 = arith.cmpf oge, %449, %cst_2 : f32
        %540 = arith.andi %483, %539 : i1
        %541 = arith.subf %449, %cst_2 : f32
        %542 = arith.divf %541, %536 : f32
        %543 = arith.addf %arg13, %542 : f32
        %544 = arith.select %540, %543, %arg13 : f32
        %545 = arith.select %475, %538, %544 : f32
        %546 = arith.select %484, %514, %545 : f32
        %cst_199 = arith.constant 2.000000e+00 : f32
        %547 = arith.mulf %cst_199, %cst_2 : f32
        %548 = arith.addf %514, %547 : f32
        %cst_200 = arith.constant 0.000000e+00 : f32
        %549 = arith.subf %cst_200, %cst_2 : f32
        %550 = arith.cmpf ole, %451, %549 : f32
        %551 = arith.andi %483, %550 : i1
        %552 = arith.addf %451, %cst_2 : f32
        %553 = arith.divf %552, %536 : f32
        %554 = arith.addf %arg14, %553 : f32
        %555 = arith.select %551, %554, %arg14 : f32
        %556 = arith.select %468, %548, %555 : f32
        %557 = arith.select %485, %514, %556 : f32
        %558 = arith.ori %453, %468 : i1
        %559 = arith.ori %558, %475 : i1
        %560 = arith.subf %514, %cst_2 : f32
        %561 = arith.subf %560, %arg13 : f32
        %562 = arith.minimumf %449, %cst_2 : f32
        %563 = arith.select %483, %562, %arg15 : f32
        %564 = arith.select %458, %561, %563 : f32
        %565 = arith.select %559, %cst_2, %564 : f32
        %566 = arith.ori %458, %468 : i1
        %567 = arith.ori %566, %475 : i1
        %cst_201 = arith.constant 0.000000e+00 : f32
        %568 = arith.subf %cst_201, %cst_2 : f32
        %569 = arith.addf %514, %cst_2 : f32
        %570 = arith.subf %569, %arg14 : f32
        %cst_202 = arith.constant 0.000000e+00 : f32
        %571 = arith.subf %cst_202, %cst_2 : f32
        %572 = arith.maximumf %451, %571 : f32
        %573 = arith.select %483, %572, %arg16 : f32
        %574 = arith.select %453, %570, %573 : f32
        %575 = arith.select %567, %568, %574 : f32
        %c1_i32_203 = arith.constant 1 : i32
        %576 = arith.select %464, %c1_i32_203, %arg17 : i32
        %c1_i32_204 = arith.constant 1 : i32
        %577 = arith.addi %arg18, %c1_i32_204 : i32
        scf.yield %517, %508, %524, %532, %546, %557, %565, %575, %576, %577 : i32, i32, i32, i32, f32, f32, f32, f32, i32, i32
      }
    }
    %c8_i32_5 = arith.constant 8 : i32
    %c0_6 = arith.constant 0 : index
    %c0_7 = arith.constant 0 : index
    %8 = vector.load %arg6[%c0_6, %c0_7] : memref<8x8xf32, #tpu.memory_space<vmem>>, vector<8x8xf32>
    %c0_8 = arith.constant 0 : index
    %c0_9 = arith.constant 0 : index
    %9 = vector.load %arg3[%c0_8, %c0_9] : memref<8x1xi32, #tpu.memory_space<vmem>>, vector<8x1xi32>
    %10 = tpu.iota {dimensions = array<i32: 1>} : vector<8x8xi32>
    %11 = vector.broadcast %9 : vector<8x1xi32> to vector<8x8xi32>
    %12 = arith.cmpi slt, %10, %11 : vector<8x8xi32>
    %cst_10 = arith.constant -3.000000e+38 : f32
    %13 = vector.broadcast %cst_10 : f32 to vector<8x8xf32>
    %14 = arith.select %12, %8, %13 : vector<8x8xi1>, vector<8x8xf32>
    %cst_11 = arith.constant dense<0xFF800000> : vector<8xf32>
    %15 = vector.multi_reduction <maximumf>, %14, %cst_11 [1] : vector<8x8xf32> to vector<8xf32>
    %16 = vector.shape_cast %15 : vector<8xf32> to vector<8x1xf32>
    %c0_i32_12 = arith.constant 0 : i32
    %17 = vector.broadcast %c0_i32_12 : i32 to vector<8x1xi32>
    %18 = arith.cmpi sgt, %9, %17 : vector<8x1xi32>
    %cst_13 = arith.constant 0.000000e+00 : f32
    %19 = vector.broadcast %cst_13 : f32 to vector<8x1xf32>
    %20 = arith.select %18, %16, %19 : vector<8x1xi1>, vector<8x1xf32>
    %cst_14 = arith.constant 1.000000e+00 : f32
    %21 = vector.broadcast %cst_14 : f32 to vector<8x1xf32>
    %22 = arith.subf %20, %21 : vector<8x1xf32>
    %c0_i32_15 = arith.constant 0 : i32
    %23 = arith.addf %22, %20 : vector<8x1xf32>
    %cst_16 = arith.constant 5.000000e-01 : f32
    %24 = vector.broadcast %cst_16 : f32 to vector<8x1xf32>
    %25 = arith.mulf %24, %23 : vector<8x1xf32>
    %26 = vector.broadcast %25 : vector<8x1xf32> to vector<8x8xf32>
    %27 = arith.subf %8, %26 : vector<8x8xf32>
    %cst_17 = arith.constant 0.000000e+00 : f32
    %28 = vector.broadcast %cst_17 : f32 to vector<8x8xf32>
    %29 = arith.maximumf %27, %28 : vector<8x8xf32>
    %cst_18 = arith.constant 0.000000e+00 : f32
    %30 = vector.broadcast %cst_18 : f32 to vector<8x8xf32>
    %31 = arith.select %12, %29, %30 : vector<8x8xi1>, vector<8x8xf32>
    %cst_19 = arith.constant dense<0.000000e+00> : vector<8xf32>
    %32 = vector.multi_reduction <add>, %31, %cst_19 [1] : vector<8x8xf32> to vector<8xf32>
    %33 = vector.shape_cast %32 : vector<8xf32> to vector<8x1xf32>
    %cst_20 = arith.constant 1.000000e+00 : f32
    %34 = vector.broadcast %cst_20 : f32 to vector<8x1xf32>
    %35 = arith.cmpf oge, %33, %34 : vector<8x1xf32>
    %36 = arith.select %35, %25, %22 : vector<8x1xi1>, vector<8x1xf32>
    %37 = arith.select %35, %20, %25 : vector<8x1xi1>, vector<8x1xf32>
    %c1_i32_21 = arith.constant 1 : i32
    %38 = arith.addf %36, %37 : vector<8x1xf32>
    %cst_22 = arith.constant 5.000000e-01 : f32
    %39 = vector.broadcast %cst_22 : f32 to vector<8x1xf32>
    %40 = arith.mulf %39, %38 : vector<8x1xf32>
    %41 = vector.broadcast %40 : vector<8x1xf32> to vector<8x8xf32>
    %42 = arith.subf %8, %41 : vector<8x8xf32>
    %cst_23 = arith.constant 0.000000e+00 : f32
    %43 = vector.broadcast %cst_23 : f32 to vector<8x8xf32>
    %44 = arith.maximumf %42, %43 : vector<8x8xf32>
    %cst_24 = arith.constant 0.000000e+00 : f32
    %45 = vector.broadcast %cst_24 : f32 to vector<8x8xf32>
    %46 = arith.select %12, %44, %45 : vector<8x8xi1>, vector<8x8xf32>
    %cst_25 = arith.constant dense<0.000000e+00> : vector<8xf32>
    %47 = vector.multi_reduction <add>, %46, %cst_25 [1] : vector<8x8xf32> to vector<8xf32>
    %48 = vector.shape_cast %47 : vector<8xf32> to vector<8x1xf32>
    %cst_26 = arith.constant 1.000000e+00 : f32
    %49 = vector.broadcast %cst_26 : f32 to vector<8x1xf32>
    %50 = arith.cmpf oge, %48, %49 : vector<8x1xf32>
    %51 = arith.select %50, %40, %36 : vector<8x1xi1>, vector<8x1xf32>
    %52 = arith.select %50, %37, %40 : vector<8x1xi1>, vector<8x1xf32>
    %c2_i32 = arith.constant 2 : i32
    %53 = arith.addf %51, %52 : vector<8x1xf32>
    %cst_27 = arith.constant 5.000000e-01 : f32
    %54 = vector.broadcast %cst_27 : f32 to vector<8x1xf32>
    %55 = arith.mulf %54, %53 : vector<8x1xf32>
    %56 = vector.broadcast %55 : vector<8x1xf32> to vector<8x8xf32>
    %57 = arith.subf %8, %56 : vector<8x8xf32>
    %cst_28 = arith.constant 0.000000e+00 : f32
    %58 = vector.broadcast %cst_28 : f32 to vector<8x8xf32>
    %59 = arith.maximumf %57, %58 : vector<8x8xf32>
    %cst_29 = arith.constant 0.000000e+00 : f32
    %60 = vector.broadcast %cst_29 : f32 to vector<8x8xf32>
    %61 = arith.select %12, %59, %60 : vector<8x8xi1>, vector<8x8xf32>
    %cst_30 = arith.constant dense<0.000000e+00> : vector<8xf32>
    %62 = vector.multi_reduction <add>, %61, %cst_30 [1] : vector<8x8xf32> to vector<8xf32>
    %63 = vector.shape_cast %62 : vector<8xf32> to vector<8x1xf32>
    %cst_31 = arith.constant 1.000000e+00 : f32
    %64 = vector.broadcast %cst_31 : f32 to vector<8x1xf32>
    %65 = arith.cmpf oge, %63, %64 : vector<8x1xf32>
    %66 = arith.select %65, %55, %51 : vector<8x1xi1>, vector<8x1xf32>
    %67 = arith.select %65, %52, %55 : vector<8x1xi1>, vector<8x1xf32>
    %c3_i32 = arith.constant 3 : i32
    %68 = arith.addf %66, %67 : vector<8x1xf32>
    %cst_32 = arith.constant 5.000000e-01 : f32
    %69 = vector.broadcast %cst_32 : f32 to vector<8x1xf32>
    %70 = arith.mulf %69, %68 : vector<8x1xf32>
    %71 = vector.broadcast %70 : vector<8x1xf32> to vector<8x8xf32>
    %72 = arith.subf %8, %71 : vector<8x8xf32>
    %cst_33 = arith.constant 0.000000e+00 : f32
    %73 = vector.broadcast %cst_33 : f32 to vector<8x8xf32>
    %74 = arith.maximumf %72, %73 : vector<8x8xf32>
    %cst_34 = arith.constant 0.000000e+00 : f32
    %75 = vector.broadcast %cst_34 : f32 to vector<8x8xf32>
    %76 = arith.select %12, %74, %75 : vector<8x8xi1>, vector<8x8xf32>
    %cst_35 = arith.constant dense<0.000000e+00> : vector<8xf32>
    %77 = vector.multi_reduction <add>, %76, %cst_35 [1] : vector<8x8xf32> to vector<8xf32>
    %78 = vector.shape_cast %77 : vector<8xf32> to vector<8x1xf32>
    %cst_36 = arith.constant 1.000000e+00 : f32
    %79 = vector.broadcast %cst_36 : f32 to vector<8x1xf32>
    %80 = arith.cmpf oge, %78, %79 : vector<8x1xf32>
    %81 = arith.select %80, %70, %66 : vector<8x1xi1>, vector<8x1xf32>
    %82 = arith.select %80, %67, %70 : vector<8x1xi1>, vector<8x1xf32>
    %c4_i32 = arith.constant 4 : i32
    %83 = arith.addf %81, %82 : vector<8x1xf32>
    %cst_37 = arith.constant 5.000000e-01 : f32
    %84 = vector.broadcast %cst_37 : f32 to vector<8x1xf32>
    %85 = arith.mulf %84, %83 : vector<8x1xf32>
    %86 = vector.broadcast %85 : vector<8x1xf32> to vector<8x8xf32>
    %87 = arith.subf %8, %86 : vector<8x8xf32>
    %cst_38 = arith.constant 0.000000e+00 : f32
    %88 = vector.broadcast %cst_38 : f32 to vector<8x8xf32>
    %89 = arith.maximumf %87, %88 : vector<8x8xf32>
    %cst_39 = arith.constant 0.000000e+00 : f32
    %90 = vector.broadcast %cst_39 : f32 to vector<8x8xf32>
    %91 = arith.select %12, %89, %90 : vector<8x8xi1>, vector<8x8xf32>
    %cst_40 = arith.constant dense<0.000000e+00> : vector<8xf32>
    %92 = vector.multi_reduction <add>, %91, %cst_40 [1] : vector<8x8xf32> to vector<8xf32>
    %93 = vector.shape_cast %92 : vector<8xf32> to vector<8x1xf32>
    %cst_41 = arith.constant 1.000000e+00 : f32
    %94 = vector.broadcast %cst_41 : f32 to vector<8x1xf32>
    %95 = arith.cmpf oge, %93, %94 : vector<8x1xf32>
    %96 = arith.select %95, %85, %81 : vector<8x1xi1>, vector<8x1xf32>
    %97 = arith.select %95, %82, %85 : vector<8x1xi1>, vector<8x1xf32>
    %c5_i32 = arith.constant 5 : i32
    %98 = arith.addf %96, %97 : vector<8x1xf32>
    %cst_42 = arith.constant 5.000000e-01 : f32
    %99 = vector.broadcast %cst_42 : f32 to vector<8x1xf32>
    %100 = arith.mulf %99, %98 : vector<8x1xf32>
    %101 = vector.broadcast %100 : vector<8x1xf32> to vector<8x8xf32>
    %102 = arith.subf %8, %101 : vector<8x8xf32>
    %cst_43 = arith.constant 0.000000e+00 : f32
    %103 = vector.broadcast %cst_43 : f32 to vector<8x8xf32>
    %104 = arith.maximumf %102, %103 : vector<8x8xf32>
    %cst_44 = arith.constant 0.000000e+00 : f32
    %105 = vector.broadcast %cst_44 : f32 to vector<8x8xf32>
    %106 = arith.select %12, %104, %105 : vector<8x8xi1>, vector<8x8xf32>
    %cst_45 = arith.constant dense<0.000000e+00> : vector<8xf32>
    %107 = vector.multi_reduction <add>, %106, %cst_45 [1] : vector<8x8xf32> to vector<8xf32>
    %108 = vector.shape_cast %107 : vector<8xf32> to vector<8x1xf32>
    %cst_46 = arith.constant 1.000000e+00 : f32
    %109 = vector.broadcast %cst_46 : f32 to vector<8x1xf32>
    %110 = arith.cmpf oge, %108, %109 : vector<8x1xf32>
    %111 = arith.select %110, %100, %96 : vector<8x1xi1>, vector<8x1xf32>
    %112 = arith.select %110, %97, %100 : vector<8x1xi1>, vector<8x1xf32>
    %c6_i32 = arith.constant 6 : i32
    %113 = arith.addf %111, %112 : vector<8x1xf32>
    %cst_47 = arith.constant 5.000000e-01 : f32
    %114 = vector.broadcast %cst_47 : f32 to vector<8x1xf32>
    %115 = arith.mulf %114, %113 : vector<8x1xf32>
    %116 = vector.broadcast %115 : vector<8x1xf32> to vector<8x8xf32>
    %117 = arith.subf %8, %116 : vector<8x8xf32>
    %cst_48 = arith.constant 0.000000e+00 : f32
    %118 = vector.broadcast %cst_48 : f32 to vector<8x8xf32>
    %119 = arith.maximumf %117, %118 : vector<8x8xf32>
    %cst_49 = arith.constant 0.000000e+00 : f32
    %120 = vector.broadcast %cst_49 : f32 to vector<8x8xf32>
    %121 = arith.select %12, %119, %120 : vector<8x8xi1>, vector<8x8xf32>
    %cst_50 = arith.constant dense<0.000000e+00> : vector<8xf32>
    %122 = vector.multi_reduction <add>, %121, %cst_50 [1] : vector<8x8xf32> to vector<8xf32>
    %123 = vector.shape_cast %122 : vector<8xf32> to vector<8x1xf32>
    %cst_51 = arith.constant 1.000000e+00 : f32
    %124 = vector.broadcast %cst_51 : f32 to vector<8x1xf32>
    %125 = arith.cmpf oge, %123, %124 : vector<8x1xf32>
    %126 = arith.select %125, %115, %111 : vector<8x1xi1>, vector<8x1xf32>
    %127 = arith.select %125, %112, %115 : vector<8x1xi1>, vector<8x1xf32>
    %c7_i32 = arith.constant 7 : i32
    %128 = arith.addf %126, %127 : vector<8x1xf32>
    %cst_52 = arith.constant 5.000000e-01 : f32
    %129 = vector.broadcast %cst_52 : f32 to vector<8x1xf32>
    %130 = arith.mulf %129, %128 : vector<8x1xf32>
    %131 = vector.broadcast %130 : vector<8x1xf32> to vector<8x8xf32>
    %132 = arith.subf %8, %131 : vector<8x8xf32>
    %cst_53 = arith.constant 0.000000e+00 : f32
    %133 = vector.broadcast %cst_53 : f32 to vector<8x8xf32>
    %134 = arith.maximumf %132, %133 : vector<8x8xf32>
    %cst_54 = arith.constant 0.000000e+00 : f32
    %135 = vector.broadcast %cst_54 : f32 to vector<8x8xf32>
    %136 = arith.select %12, %134, %135 : vector<8x8xi1>, vector<8x8xf32>
    %cst_55 = arith.constant dense<0.000000e+00> : vector<8xf32>
    %137 = vector.multi_reduction <add>, %136, %cst_55 [1] : vector<8x8xf32> to vector<8xf32>
    %138 = vector.shape_cast %137 : vector<8xf32> to vector<8x1xf32>
    %cst_56 = arith.constant 1.000000e+00 : f32
    %139 = vector.broadcast %cst_56 : f32 to vector<8x1xf32>
    %140 = arith.cmpf oge, %138, %139 : vector<8x1xf32>
    %141 = arith.select %140, %130, %126 : vector<8x1xi1>, vector<8x1xf32>
    %142 = arith.select %140, %127, %130 : vector<8x1xi1>, vector<8x1xf32>
    %c8_i32_57 = arith.constant 8 : i32
    %143 = arith.addf %141, %142 : vector<8x1xf32>
    %cst_58 = arith.constant 5.000000e-01 : f32
    %144 = vector.broadcast %cst_58 : f32 to vector<8x1xf32>
    %145 = arith.mulf %144, %143 : vector<8x1xf32>
    %146 = vector.broadcast %145 : vector<8x1xf32> to vector<8x8xf32>
    %147 = arith.subf %8, %146 : vector<8x8xf32>
    %cst_59 = arith.constant 0.000000e+00 : f32
    %148 = vector.broadcast %cst_59 : f32 to vector<8x8xf32>
    %149 = arith.maximumf %147, %148 : vector<8x8xf32>
    %cst_60 = arith.constant 0.000000e+00 : f32
    %150 = vector.broadcast %cst_60 : f32 to vector<8x8xf32>
    %151 = arith.select %12, %149, %150 : vector<8x8xi1>, vector<8x8xf32>
    %cst_61 = arith.constant dense<0.000000e+00> : vector<8xf32>
    %152 = vector.multi_reduction <add>, %151, %cst_61 [1] : vector<8x8xf32> to vector<8xf32>
    %153 = vector.shape_cast %152 : vector<8xf32> to vector<8x1xf32>
    %cst_62 = arith.constant 1.000000e+00 : f32
    %154 = vector.broadcast %cst_62 : f32 to vector<8x1xf32>
    %155 = arith.cmpf oge, %153, %154 : vector<8x1xf32>
    %156 = arith.select %155, %145, %141 : vector<8x1xi1>, vector<8x1xf32>
    %157 = arith.select %155, %142, %145 : vector<8x1xi1>, vector<8x1xf32>
    %c9_i32 = arith.constant 9 : i32
    %158 = arith.addf %156, %157 : vector<8x1xf32>
    %cst_63 = arith.constant 5.000000e-01 : f32
    %159 = vector.broadcast %cst_63 : f32 to vector<8x1xf32>
    %160 = arith.mulf %159, %158 : vector<8x1xf32>
    %161 = vector.broadcast %160 : vector<8x1xf32> to vector<8x8xf32>
    %162 = arith.subf %8, %161 : vector<8x8xf32>
    %cst_64 = arith.constant 0.000000e+00 : f32
    %163 = vector.broadcast %cst_64 : f32 to vector<8x8xf32>
    %164 = arith.maximumf %162, %163 : vector<8x8xf32>
    %cst_65 = arith.constant 0.000000e+00 : f32
    %165 = vector.broadcast %cst_65 : f32 to vector<8x8xf32>
    %166 = arith.select %12, %164, %165 : vector<8x8xi1>, vector<8x8xf32>
    %cst_66 = arith.constant dense<0.000000e+00> : vector<8xf32>
    %167 = vector.multi_reduction <add>, %166, %cst_66 [1] : vector<8x8xf32> to vector<8xf32>
    %168 = vector.shape_cast %167 : vector<8xf32> to vector<8x1xf32>
    %cst_67 = arith.constant 1.000000e+00 : f32
    %169 = vector.broadcast %cst_67 : f32 to vector<8x1xf32>
    %170 = arith.cmpf oge, %168, %169 : vector<8x1xf32>
    %171 = arith.select %170, %160, %156 : vector<8x1xi1>, vector<8x1xf32>
    %172 = arith.select %170, %157, %160 : vector<8x1xi1>, vector<8x1xf32>
    %c10_i32 = arith.constant 10 : i32
    %173 = arith.addf %171, %172 : vector<8x1xf32>
    %cst_68 = arith.constant 5.000000e-01 : f32
    %174 = vector.broadcast %cst_68 : f32 to vector<8x1xf32>
    %175 = arith.mulf %174, %173 : vector<8x1xf32>
    %176 = vector.broadcast %175 : vector<8x1xf32> to vector<8x8xf32>
    %177 = arith.subf %8, %176 : vector<8x8xf32>
    %cst_69 = arith.constant 0.000000e+00 : f32
    %178 = vector.broadcast %cst_69 : f32 to vector<8x8xf32>
    %179 = arith.maximumf %177, %178 : vector<8x8xf32>
    %cst_70 = arith.constant 0.000000e+00 : f32
    %180 = vector.broadcast %cst_70 : f32 to vector<8x8xf32>
    %181 = arith.select %12, %179, %180 : vector<8x8xi1>, vector<8x8xf32>
    %cst_71 = arith.constant dense<0.000000e+00> : vector<8xf32>
    %182 = vector.multi_reduction <add>, %181, %cst_71 [1] : vector<8x8xf32> to vector<8xf32>
    %183 = vector.shape_cast %182 : vector<8xf32> to vector<8x1xf32>
    %cst_72 = arith.constant 1.000000e+00 : f32
    %184 = vector.broadcast %cst_72 : f32 to vector<8x1xf32>
    %185 = arith.cmpf oge, %183, %184 : vector<8x1xf32>
    %186 = arith.select %185, %175, %171 : vector<8x1xi1>, vector<8x1xf32>
    %187 = arith.select %185, %172, %175 : vector<8x1xi1>, vector<8x1xf32>
    %c11_i32 = arith.constant 11 : i32
    %188 = arith.addf %186, %187 : vector<8x1xf32>
    %cst_73 = arith.constant 5.000000e-01 : f32
    %189 = vector.broadcast %cst_73 : f32 to vector<8x1xf32>
    %190 = arith.mulf %189, %188 : vector<8x1xf32>
    %191 = vector.broadcast %190 : vector<8x1xf32> to vector<8x8xf32>
    %192 = arith.subf %8, %191 : vector<8x8xf32>
    %cst_74 = arith.constant 0.000000e+00 : f32
    %193 = vector.broadcast %cst_74 : f32 to vector<8x8xf32>
    %194 = arith.maximumf %192, %193 : vector<8x8xf32>
    %cst_75 = arith.constant 0.000000e+00 : f32
    %195 = vector.broadcast %cst_75 : f32 to vector<8x8xf32>
    %196 = arith.select %12, %194, %195 : vector<8x8xi1>, vector<8x8xf32>
    %cst_76 = arith.constant dense<0.000000e+00> : vector<8xf32>
    %197 = vector.multi_reduction <add>, %196, %cst_76 [1] : vector<8x8xf32> to vector<8xf32>
    %198 = vector.shape_cast %197 : vector<8xf32> to vector<8x1xf32>
    %cst_77 = arith.constant 1.000000e+00 : f32
    %199 = vector.broadcast %cst_77 : f32 to vector<8x1xf32>
    %200 = arith.cmpf oge, %198, %199 : vector<8x1xf32>
    %201 = arith.select %200, %190, %186 : vector<8x1xi1>, vector<8x1xf32>
    %202 = arith.select %200, %187, %190 : vector<8x1xi1>, vector<8x1xf32>
    %c12_i32 = arith.constant 12 : i32
    %203 = arith.addf %201, %202 : vector<8x1xf32>
    %cst_78 = arith.constant 5.000000e-01 : f32
    %204 = vector.broadcast %cst_78 : f32 to vector<8x1xf32>
    %205 = arith.mulf %204, %203 : vector<8x1xf32>
    %206 = vector.broadcast %205 : vector<8x1xf32> to vector<8x8xf32>
    %207 = arith.subf %8, %206 : vector<8x8xf32>
    %cst_79 = arith.constant 0.000000e+00 : f32
    %208 = vector.broadcast %cst_79 : f32 to vector<8x8xf32>
    %209 = arith.maximumf %207, %208 : vector<8x8xf32>
    %cst_80 = arith.constant 0.000000e+00 : f32
    %210 = vector.broadcast %cst_80 : f32 to vector<8x8xf32>
    %211 = arith.select %12, %209, %210 : vector<8x8xi1>, vector<8x8xf32>
    %cst_81 = arith.constant dense<0.000000e+00> : vector<8xf32>
    %212 = vector.multi_reduction <add>, %211, %cst_81 [1] : vector<8x8xf32> to vector<8xf32>
    %213 = vector.shape_cast %212 : vector<8xf32> to vector<8x1xf32>
    %cst_82 = arith.constant 1.000000e+00 : f32
    %214 = vector.broadcast %cst_82 : f32 to vector<8x1xf32>
    %215 = arith.cmpf oge, %213, %214 : vector<8x1xf32>
    %216 = arith.select %215, %205, %201 : vector<8x1xi1>, vector<8x1xf32>
    %217 = arith.select %215, %202, %205 : vector<8x1xi1>, vector<8x1xf32>
    %c13_i32 = arith.constant 13 : i32
    %218 = arith.addf %216, %217 : vector<8x1xf32>
    %cst_83 = arith.constant 5.000000e-01 : f32
    %219 = vector.broadcast %cst_83 : f32 to vector<8x1xf32>
    %220 = arith.mulf %219, %218 : vector<8x1xf32>
    %221 = vector.broadcast %220 : vector<8x1xf32> to vector<8x8xf32>
    %222 = arith.subf %8, %221 : vector<8x8xf32>
    %cst_84 = arith.constant 0.000000e+00 : f32
    %223 = vector.broadcast %cst_84 : f32 to vector<8x8xf32>
    %224 = arith.maximumf %222, %223 : vector<8x8xf32>
    %cst_85 = arith.constant 0.000000e+00 : f32
    %225 = vector.broadcast %cst_85 : f32 to vector<8x8xf32>
    %226 = arith.select %12, %224, %225 : vector<8x8xi1>, vector<8x8xf32>
    %cst_86 = arith.constant dense<0.000000e+00> : vector<8xf32>
    %227 = vector.multi_reduction <add>, %226, %cst_86 [1] : vector<8x8xf32> to vector<8xf32>
    %228 = vector.shape_cast %227 : vector<8xf32> to vector<8x1xf32>
    %cst_87 = arith.constant 1.000000e+00 : f32
    %229 = vector.broadcast %cst_87 : f32 to vector<8x1xf32>
    %230 = arith.cmpf oge, %228, %229 : vector<8x1xf32>
    %231 = arith.select %230, %220, %216 : vector<8x1xi1>, vector<8x1xf32>
    %232 = arith.select %230, %217, %220 : vector<8x1xi1>, vector<8x1xf32>
    %c14_i32 = arith.constant 14 : i32
    %233 = arith.addf %231, %232 : vector<8x1xf32>
    %cst_88 = arith.constant 5.000000e-01 : f32
    %234 = vector.broadcast %cst_88 : f32 to vector<8x1xf32>
    %235 = arith.mulf %234, %233 : vector<8x1xf32>
    %236 = vector.broadcast %235 : vector<8x1xf32> to vector<8x8xf32>
    %237 = arith.subf %8, %236 : vector<8x8xf32>
    %cst_89 = arith.constant 0.000000e+00 : f32
    %238 = vector.broadcast %cst_89 : f32 to vector<8x8xf32>
    %239 = arith.maximumf %237, %238 : vector<8x8xf32>
    %cst_90 = arith.constant 0.000000e+00 : f32
    %240 = vector.broadcast %cst_90 : f32 to vector<8x8xf32>
    %241 = arith.select %12, %239, %240 : vector<8x8xi1>, vector<8x8xf32>
    %cst_91 = arith.constant dense<0.000000e+00> : vector<8xf32>
    %242 = vector.multi_reduction <add>, %241, %cst_91 [1] : vector<8x8xf32> to vector<8xf32>
    %243 = vector.shape_cast %242 : vector<8xf32> to vector<8x1xf32>
    %cst_92 = arith.constant 1.000000e+00 : f32
    %244 = vector.broadcast %cst_92 : f32 to vector<8x1xf32>
    %245 = arith.cmpf oge, %243, %244 : vector<8x1xf32>
    %246 = arith.select %245, %235, %231 : vector<8x1xi1>, vector<8x1xf32>
    %247 = arith.select %245, %232, %235 : vector<8x1xi1>, vector<8x1xf32>
    %c15_i32 = arith.constant 15 : i32
    %248 = arith.addf %246, %247 : vector<8x1xf32>
    %cst_93 = arith.constant 5.000000e-01 : f32
    %249 = vector.broadcast %cst_93 : f32 to vector<8x1xf32>
    %250 = arith.mulf %249, %248 : vector<8x1xf32>
    %251 = vector.broadcast %250 : vector<8x1xf32> to vector<8x8xf32>
    %252 = arith.subf %8, %251 : vector<8x8xf32>
    %cst_94 = arith.constant 0.000000e+00 : f32
    %253 = vector.broadcast %cst_94 : f32 to vector<8x8xf32>
    %254 = arith.maximumf %252, %253 : vector<8x8xf32>
    %cst_95 = arith.constant 0.000000e+00 : f32
    %255 = vector.broadcast %cst_95 : f32 to vector<8x8xf32>
    %256 = arith.select %12, %254, %255 : vector<8x8xi1>, vector<8x8xf32>
    %cst_96 = arith.constant dense<0.000000e+00> : vector<8xf32>
    %257 = vector.multi_reduction <add>, %256, %cst_96 [1] : vector<8x8xf32> to vector<8xf32>
    %258 = vector.shape_cast %257 : vector<8xf32> to vector<8x1xf32>
    %cst_97 = arith.constant 1.000000e+00 : f32
    %259 = vector.broadcast %cst_97 : f32 to vector<8x1xf32>
    %260 = arith.cmpf oge, %258, %259 : vector<8x1xf32>
    %261 = arith.select %260, %250, %246 : vector<8x1xi1>, vector<8x1xf32>
    %262 = arith.select %260, %247, %250 : vector<8x1xi1>, vector<8x1xf32>
    %c16_i32 = arith.constant 16 : i32
    %263 = arith.addf %261, %262 : vector<8x1xf32>
    %cst_98 = arith.constant 5.000000e-01 : f32
    %264 = vector.broadcast %cst_98 : f32 to vector<8x1xf32>
    %265 = arith.mulf %264, %263 : vector<8x1xf32>
    %266 = vector.broadcast %265 : vector<8x1xf32> to vector<8x8xf32>
    %267 = arith.subf %8, %266 : vector<8x8xf32>
    %cst_99 = arith.constant 0.000000e+00 : f32
    %268 = vector.broadcast %cst_99 : f32 to vector<8x8xf32>
    %269 = arith.maximumf %267, %268 : vector<8x8xf32>
    %cst_100 = arith.constant 0.000000e+00 : f32
    %270 = vector.broadcast %cst_100 : f32 to vector<8x8xf32>
    %271 = arith.select %12, %269, %270 : vector<8x8xi1>, vector<8x8xf32>
    %cst_101 = arith.constant dense<0.000000e+00> : vector<8xf32>
    %272 = vector.multi_reduction <add>, %271, %cst_101 [1] : vector<8x8xf32> to vector<8xf32>
    %273 = vector.shape_cast %272 : vector<8xf32> to vector<8x1xf32>
    %cst_102 = arith.constant 1.000000e+00 : f32
    %274 = vector.broadcast %cst_102 : f32 to vector<8x1xf32>
    %275 = arith.cmpf oge, %273, %274 : vector<8x1xf32>
    %276 = arith.select %275, %265, %261 : vector<8x1xi1>, vector<8x1xf32>
    %277 = arith.select %275, %262, %265 : vector<8x1xi1>, vector<8x1xf32>
    %c17_i32 = arith.constant 17 : i32
    %278 = arith.addf %276, %277 : vector<8x1xf32>
    %cst_103 = arith.constant 5.000000e-01 : f32
    %279 = vector.broadcast %cst_103 : f32 to vector<8x1xf32>
    %280 = arith.mulf %279, %278 : vector<8x1xf32>
    %281 = vector.broadcast %280 : vector<8x1xf32> to vector<8x8xf32>
    %282 = arith.subf %8, %281 : vector<8x8xf32>
    %cst_104 = arith.constant 0.000000e+00 : f32
    %283 = vector.broadcast %cst_104 : f32 to vector<8x8xf32>
    %284 = arith.maximumf %282, %283 : vector<8x8xf32>
    %cst_105 = arith.constant 0.000000e+00 : f32
    %285 = vector.broadcast %cst_105 : f32 to vector<8x8xf32>
    %286 = arith.select %12, %284, %285 : vector<8x8xi1>, vector<8x8xf32>
    %cst_106 = arith.constant dense<0.000000e+00> : vector<8xf32>
    %287 = vector.multi_reduction <add>, %286, %cst_106 [1] : vector<8x8xf32> to vector<8xf32>
    %288 = vector.shape_cast %287 : vector<8xf32> to vector<8x1xf32>
    %cst_107 = arith.constant 1.000000e+00 : f32
    %289 = vector.broadcast %cst_107 : f32 to vector<8x1xf32>
    %290 = arith.cmpf oge, %288, %289 : vector<8x1xf32>
    %291 = arith.select %290, %280, %276 : vector<8x1xi1>, vector<8x1xf32>
    %292 = arith.select %290, %277, %280 : vector<8x1xi1>, vector<8x1xf32>
    %c18_i32 = arith.constant 18 : i32
    %293 = arith.addf %291, %292 : vector<8x1xf32>
    %cst_108 = arith.constant 5.000000e-01 : f32
    %294 = vector.broadcast %cst_108 : f32 to vector<8x1xf32>
    %295 = arith.mulf %294, %293 : vector<8x1xf32>
    %296 = vector.broadcast %295 : vector<8x1xf32> to vector<8x8xf32>
    %297 = arith.subf %8, %296 : vector<8x8xf32>
    %cst_109 = arith.constant 0.000000e+00 : f32
    %298 = vector.broadcast %cst_109 : f32 to vector<8x8xf32>
    %299 = arith.maximumf %297, %298 : vector<8x8xf32>
    %cst_110 = arith.constant 0.000000e+00 : f32
    %300 = vector.broadcast %cst_110 : f32 to vector<8x8xf32>
    %301 = arith.select %12, %299, %300 : vector<8x8xi1>, vector<8x8xf32>
    %cst_111 = arith.constant dense<0.000000e+00> : vector<8xf32>
    %302 = vector.multi_reduction <add>, %301, %cst_111 [1] : vector<8x8xf32> to vector<8xf32>
    %303 = vector.shape_cast %302 : vector<8xf32> to vector<8x1xf32>
    %cst_112 = arith.constant 1.000000e+00 : f32
    %304 = vector.broadcast %cst_112 : f32 to vector<8x1xf32>
    %305 = arith.cmpf oge, %303, %304 : vector<8x1xf32>
    %306 = arith.select %305, %295, %291 : vector<8x1xi1>, vector<8x1xf32>
    %307 = arith.select %305, %292, %295 : vector<8x1xi1>, vector<8x1xf32>
    %c19_i32 = arith.constant 19 : i32
    %308 = arith.addf %306, %307 : vector<8x1xf32>
    %cst_113 = arith.constant 5.000000e-01 : f32
    %309 = vector.broadcast %cst_113 : f32 to vector<8x1xf32>
    %310 = arith.mulf %309, %308 : vector<8x1xf32>
    %311 = vector.broadcast %310 : vector<8x1xf32> to vector<8x8xf32>
    %312 = arith.subf %8, %311 : vector<8x8xf32>
    %cst_114 = arith.constant 0.000000e+00 : f32
    %313 = vector.broadcast %cst_114 : f32 to vector<8x8xf32>
    %314 = arith.maximumf %312, %313 : vector<8x8xf32>
    %cst_115 = arith.constant 0.000000e+00 : f32
    %315 = vector.broadcast %cst_115 : f32 to vector<8x8xf32>
    %316 = arith.select %12, %314, %315 : vector<8x8xi1>, vector<8x8xf32>
    %cst_116 = arith.constant dense<0.000000e+00> : vector<8xf32>
    %317 = vector.multi_reduction <add>, %316, %cst_116 [1] : vector<8x8xf32> to vector<8xf32>
    %318 = vector.shape_cast %317 : vector<8xf32> to vector<8x1xf32>
    %cst_117 = arith.constant 1.000000e+00 : f32
    %319 = vector.broadcast %cst_117 : f32 to vector<8x1xf32>
    %320 = arith.cmpf oge, %318, %319 : vector<8x1xf32>
    %321 = arith.select %320, %310, %306 : vector<8x1xi1>, vector<8x1xf32>
    %322 = arith.select %320, %307, %310 : vector<8x1xi1>, vector<8x1xf32>
    %c20_i32 = arith.constant 20 : i32
    %323 = arith.addf %321, %322 : vector<8x1xf32>
    %cst_118 = arith.constant 5.000000e-01 : f32
    %324 = vector.broadcast %cst_118 : f32 to vector<8x1xf32>
    %325 = arith.mulf %324, %323 : vector<8x1xf32>
    %326 = vector.broadcast %325 : vector<8x1xf32> to vector<8x8xf32>
    %327 = arith.subf %8, %326 : vector<8x8xf32>
    %cst_119 = arith.constant 0.000000e+00 : f32
    %328 = vector.broadcast %cst_119 : f32 to vector<8x8xf32>
    %329 = arith.maximumf %327, %328 : vector<8x8xf32>
    %cst_120 = arith.constant 0.000000e+00 : f32
    %330 = vector.broadcast %cst_120 : f32 to vector<8x8xf32>
    %331 = arith.select %12, %329, %330 : vector<8x8xi1>, vector<8x8xf32>
    %cst_121 = arith.constant dense<0.000000e+00> : vector<8xf32>
    %332 = vector.multi_reduction <add>, %331, %cst_121 [1] : vector<8x8xf32> to vector<8xf32>
    %333 = vector.shape_cast %332 : vector<8xf32> to vector<8x1xf32>
    %cst_122 = arith.constant 1.000000e+00 : f32
    %334 = vector.broadcast %cst_122 : f32 to vector<8x1xf32>
    %335 = arith.cmpf oge, %333, %334 : vector<8x1xf32>
    %336 = arith.select %335, %325, %321 : vector<8x1xi1>, vector<8x1xf32>
    %337 = arith.select %335, %322, %325 : vector<8x1xi1>, vector<8x1xf32>
    %c21_i32 = arith.constant 21 : i32
    %338 = arith.addf %336, %337 : vector<8x1xf32>
    %cst_123 = arith.constant 5.000000e-01 : f32
    %339 = vector.broadcast %cst_123 : f32 to vector<8x1xf32>
    %340 = arith.mulf %339, %338 : vector<8x1xf32>
    %341 = vector.broadcast %340 : vector<8x1xf32> to vector<8x8xf32>
    %342 = arith.subf %8, %341 : vector<8x8xf32>
    %cst_124 = arith.constant 0.000000e+00 : f32
    %343 = vector.broadcast %cst_124 : f32 to vector<8x8xf32>
    %344 = arith.maximumf %342, %343 : vector<8x8xf32>
    %cst_125 = arith.constant 0.000000e+00 : f32
    %345 = vector.broadcast %cst_125 : f32 to vector<8x8xf32>
    %346 = arith.select %12, %344, %345 : vector<8x8xi1>, vector<8x8xf32>
    %cst_126 = arith.constant dense<0.000000e+00> : vector<8xf32>
    %347 = vector.multi_reduction <add>, %346, %cst_126 [1] : vector<8x8xf32> to vector<8xf32>
    %348 = vector.shape_cast %347 : vector<8xf32> to vector<8x1xf32>
    %cst_127 = arith.constant 1.000000e+00 : f32
    %349 = vector.broadcast %cst_127 : f32 to vector<8x1xf32>
    %350 = arith.cmpf oge, %348, %349 : vector<8x1xf32>
    %351 = arith.select %350, %340, %336 : vector<8x1xi1>, vector<8x1xf32>
    %352 = arith.select %350, %337, %340 : vector<8x1xi1>, vector<8x1xf32>
    %c22_i32 = arith.constant 22 : i32
    %353 = arith.addf %351, %352 : vector<8x1xf32>
    %cst_128 = arith.constant 5.000000e-01 : f32
    %354 = vector.broadcast %cst_128 : f32 to vector<8x1xf32>
    %355 = arith.mulf %354, %353 : vector<8x1xf32>
    %356 = vector.broadcast %355 : vector<8x1xf32> to vector<8x8xf32>
    %357 = arith.subf %8, %356 : vector<8x8xf32>
    %cst_129 = arith.constant 0.000000e+00 : f32
    %358 = vector.broadcast %cst_129 : f32 to vector<8x8xf32>
    %359 = arith.maximumf %357, %358 : vector<8x8xf32>
    %cst_130 = arith.constant 0.000000e+00 : f32
    %360 = vector.broadcast %cst_130 : f32 to vector<8x8xf32>
    %361 = arith.select %12, %359, %360 : vector<8x8xi1>, vector<8x8xf32>
    %cst_131 = arith.constant dense<0.000000e+00> : vector<8xf32>
    %362 = vector.multi_reduction <add>, %361, %cst_131 [1] : vector<8x8xf32> to vector<8xf32>
    %363 = vector.shape_cast %362 : vector<8xf32> to vector<8x1xf32>
    %cst_132 = arith.constant 1.000000e+00 : f32
    %364 = vector.broadcast %cst_132 : f32 to vector<8x1xf32>
    %365 = arith.cmpf oge, %363, %364 : vector<8x1xf32>
    %366 = arith.select %365, %355, %351 : vector<8x1xi1>, vector<8x1xf32>
    %367 = arith.select %365, %352, %355 : vector<8x1xi1>, vector<8x1xf32>
    %c23_i32 = arith.constant 23 : i32
    %368 = arith.addf %366, %367 : vector<8x1xf32>
    %cst_133 = arith.constant 5.000000e-01 : f32
    %369 = vector.broadcast %cst_133 : f32 to vector<8x1xf32>
    %370 = arith.mulf %369, %368 : vector<8x1xf32>
    %371 = vector.broadcast %370 : vector<8x1xf32> to vector<8x8xf32>
    %372 = arith.subf %8, %371 : vector<8x8xf32>
    %cst_134 = arith.constant 0.000000e+00 : f32
    %373 = vector.broadcast %cst_134 : f32 to vector<8x8xf32>
    %374 = arith.maximumf %372, %373 : vector<8x8xf32>
    %cst_135 = arith.constant 0.000000e+00 : f32
    %375 = vector.broadcast %cst_135 : f32 to vector<8x8xf32>
    %376 = arith.select %12, %374, %375 : vector<8x8xi1>, vector<8x8xf32>
    %cst_136 = arith.constant dense<0.000000e+00> : vector<8xf32>
    %377 = vector.multi_reduction <add>, %376, %cst_136 [1] : vector<8x8xf32> to vector<8xf32>
    %378 = vector.shape_cast %377 : vector<8xf32> to vector<8x1xf32>
    %cst_137 = arith.constant 1.000000e+00 : f32
    %379 = vector.broadcast %cst_137 : f32 to vector<8x1xf32>
    %380 = arith.cmpf oge, %378, %379 : vector<8x1xf32>
    %381 = arith.select %380, %370, %366 : vector<8x1xi1>, vector<8x1xf32>
    %382 = arith.select %380, %367, %370 : vector<8x1xi1>, vector<8x1xf32>
    %c24_i32 = arith.constant 24 : i32
    %383 = arith.addf %381, %382 : vector<8x1xf32>
    %cst_138 = arith.constant 5.000000e-01 : f32
    %384 = vector.broadcast %cst_138 : f32 to vector<8x1xf32>
    %385 = arith.mulf %384, %383 : vector<8x1xf32>
    %386 = vector.broadcast %385 : vector<8x1xf32> to vector<8x8xf32>
    %387 = arith.subf %8, %386 : vector<8x8xf32>
    %cst_139 = arith.constant 0.000000e+00 : f32
    %388 = vector.broadcast %cst_139 : f32 to vector<8x8xf32>
    %389 = arith.maximumf %387, %388 : vector<8x8xf32>
    %cst_140 = arith.constant 0.000000e+00 : f32
    %390 = vector.broadcast %cst_140 : f32 to vector<8x8xf32>
    %391 = arith.select %12, %389, %390 : vector<8x8xi1>, vector<8x8xf32>
    %cst_141 = arith.constant dense<0.000000e+00> : vector<8xf32>
    %392 = vector.multi_reduction <add>, %391, %cst_141 [1] : vector<8x8xf32> to vector<8xf32>
    %393 = vector.shape_cast %392 : vector<8xf32> to vector<8x1xf32>
    %cst_142 = arith.constant 1.000000e+00 : f32
    %394 = vector.broadcast %cst_142 : f32 to vector<8x1xf32>
    %395 = arith.cmpf oge, %393, %394 : vector<8x1xf32>
    %396 = arith.select %395, %385, %381 : vector<8x1xi1>, vector<8x1xf32>
    %397 = arith.select %395, %382, %385 : vector<8x1xi1>, vector<8x1xf32>
    %398 = vector.broadcast %396 : vector<8x1xf32> to vector<8x8xf32>
    %399 = arith.cmpf ogt, %8, %398 : vector<8x8xf32>
    %400 = arith.andi %12, %399 : vector<8x8xi1>
    %cst_143 = arith.constant 1.000000e+00 : f32
    %cst_144 = arith.constant 0.000000e+00 : f32
    %401 = vector.broadcast %cst_143 : f32 to vector<8x8xf32>
    %402 = vector.broadcast %cst_144 : f32 to vector<8x8xf32>
    %403 = arith.select %400, %401, %402 : vector<8x8xi1>, vector<8x8xf32>
    %cst_145 = arith.constant dense<0.000000e+00> : vector<8xf32>
    %404 = vector.multi_reduction <add>, %403, %cst_145 [1] : vector<8x8xf32> to vector<8xf32>
    %405 = vector.shape_cast %404 : vector<8xf32> to vector<8x1xf32>
    %cst_146 = arith.constant 0.000000e+00 : f32
    %406 = vector.broadcast %cst_146 : f32 to vector<8x8xf32>
    %407 = arith.select %400, %8, %406 : vector<8x8xi1>, vector<8x8xf32>
    %cst_147 = arith.constant dense<0.000000e+00> : vector<8xf32>
    %408 = vector.multi_reduction <add>, %407, %cst_147 [1] : vector<8x8xf32> to vector<8xf32>
    %409 = vector.shape_cast %408 : vector<8xf32> to vector<8x1xf32>
    %cst_148 = arith.constant 1.000000e+00 : f32
    %410 = vector.broadcast %cst_148 : f32 to vector<8x1xf32>
    %411 = arith.subf %409, %410 : vector<8x1xf32>
    %cst_149 = arith.constant 1.000000e+00 : f32
    %412 = vector.broadcast %cst_149 : f32 to vector<8x1xf32>
    %413 = arith.maximumf %405, %412 : vector<8x1xf32>
    %414 = arith.divf %411, %413 : vector<8x1xf32>
    %cst_150 = arith.constant 0.000000e+00 : f32
    %415 = vector.broadcast %cst_150 : f32 to vector<8x1xf32>
    %416 = arith.cmpf ogt, %405, %415 : vector<8x1xf32>
    %cst_151 = arith.constant 0.000000e+00 : f32
    %417 = vector.broadcast %cst_151 : f32 to vector<8x1xf32>
    %418 = arith.select %416, %414, %417 : vector<8x1xi1>, vector<8x1xf32>
    %419 = vector.broadcast %418 : vector<8x1xf32> to vector<8x8xf32>
    %420 = arith.subf %8, %419 : vector<8x8xf32>
    %cst_152 = arith.constant 0.000000e+00 : f32
    %421 = vector.broadcast %cst_152 : f32 to vector<8x8xf32>
    %422 = arith.maximumf %420, %421 : vector<8x8xf32>
    %cst_153 = arith.constant 0.000000e+00 : f32
    %423 = vector.broadcast %cst_153 : f32 to vector<8x8xf32>
    %424 = arith.select %12, %422, %423 : vector<8x8xi1>, vector<8x8xf32>
    %c0_154 = arith.constant 0 : index
    %c0_155 = arith.constant 0 : index
    %425 = vector.load %arg4[%c0_154, %c0_155] : memref<8x8xf32, #tpu.memory_space<vmem>>, vector<8x8xf32>
    tpu.vector_store %arg4[%c0_154, %c0_155], %424 {strides = array<i32>} : memref<8x8xf32, #tpu.memory_space<vmem>>, vector<8x8xf32>,
    return
  }
  func.func @transform_1(%arg0: i32) -> i32 {
    %c0_i32 = arith.constant 0 : i32
    %c0_i32_0 = arith.constant 0 : i32
    return %c0_i32 : i32
  }
  func.func @transform_2(%arg0: i32) -> (i32, i32) {
    %c0_i32 = arith.constant 0 : i32
    %c0_i32_0 = arith.constant 0 : i32
    return %arg0, %c0_i32 : i32, i32
  }
  func.func @transform_3(%arg0: i32) -> (i32, i32) {
    %c0_i32 = arith.constant 0 : i32
    %c0_i32_0 = arith.constant 0 : i32
    return %arg0, %c0_i32 : i32, i32
  }
}

</mosaic_0001>

<bundles_post_ra>
// kernel: tpu_custom_call.1
= control target key start
LH: loop header
LB: loop body
LE: loop exit
PB: predicated region body
PF: predicated region fallthrough
CT: control target
= control target key end

     0   :  { %s1640_s0 = inlined_call_operand.vmem [shape: f32[8,8], index: 0, kind: input, shape index: {}]   ;;  %s1641_s1 = inlined_call_operand.vmem [shape: s32[8], index: 1, kind: input, shape index: {}]   ;;  %s1642_s2 = inlined_call_operand.vmem [shape: s32[8,1], index: 2, kind: input, shape index: {}]   ;;  %s1643_s3 = inlined_call_operand.hbm [shape: f32[8,8], index: 3, kind: output, shape index: {}]  }
   0x1   :  { %1662 = sst [smem:[#allocation23_spill]] %s1642_s2 }
   0x2   :  { %1663 = sst [smem:[#allocation24_spill]] %s1643_s3 }
   0x3   :  { %8 = vsyncpa [#allocation7], 0 }
   0x4   :  { %9 = vsyncpa [#allocation6], 0  ;;  %s15_s14 = sshll.u32 %s1641_s1, 4  ;;  %s1063_s15 = smov [#allocation5]   ;;  %s16_s14 = int_to_ptr.vmem [resolvable:$true] %s15_s14 }
   0x5   :  { %18 = dma.vmem_to_smem %s16_s14, 16, %s1063_s15, [#allocation7]  }
   0x6   :  { %1013 = dma.done.wait [#allocation7], 16  }
   0x7   :  { %1014 = vsyncadd [#allocation7], 4294967280 }
   0x8   :  { %25 = sfence }
   0x9   :  { %s35_s18 = sshll.u32 %s1640_s0, 4  ;;  %s1064_s19 = smov [#allocation2]   ;;  %s36_s18 = int_to_ptr.vmem [resolvable:$true] %s35_s18 }
   0xa   :  { %38 = dma.vmem_to_smem %s36_s18, 128, %s1064_s19, [#allocation4] }
   0xb   :  { %1015 = dma.done.wait [#allocation4], 128 }
   0xc   :  { %1016 = vsyncadd [#allocation4], 4294967168 }
   0xd   :  { %42 = sfence }
   0xe   :  { %vm43_vm0 = vcmask 64512   ;;  %v45_v0 = vlaneseq  ;;  %v1065_v1 = vmov 0.0   ;;  %s1100_s1 = smov 0  }
   0xf   :  { %44 = vst.msk [vmem:[#allocation3] sm:$0xff] %vm43_vm0, %v1065_v1 }
  0x10   :  { %v1098_v2 = vand.u32 127, %v45_v0 }
  0x11 LB: > { %1664 = sst [smem:[#allocation16_spill]] %s1021_s1  ;;  %s785_s20 = sshll.u32 %s1021_s1, 7  ;;  %s1021_s1 = sphi %s1100_s1, %s52_s1  }
  0x12   : > { %s1106_s0 = sld [smem:[#allocation5 + %s1021_s1]] }
  0x13   : > { %s56_s21 = sld [smem:[#allocation2 + %s785_s20]] }
  0x18   : > { %1665 = sst [smem:[#allocation17_spill]] %s1106_s0  ;;  %s57_s22 = sadd.s32 1, %s1106_s0 }
  0x19   : > { %s1110_s23 = smul.u32 %s57_s22, %s57_s22  ;;  %s786_s24 = sadd.f32 -1.0, %s56_s21  }
  0x1a   : > { %s61_s25 = sadd.f32 1.0, %s56_s21   ;;  %p1644_p1 = scmp.gt.s32.totalorder %s1106_s0, 0 }
  0x1b   : > { %1666 = sst [smem:[#allocation18_spill]] %s1110_s23  ;;  %s1652_s26 = sadd.s32 2, %s1110_s23 }
  0x1c   : > { %p787_p0 = scmp.gt.s32.totalorder %s1652_s26, 0 }
  0x1e   : > { %p758_p2 = pnand %p787_p0, %p1644_p1 }
  0x20   : > { %759 = sbr.rel (%p758_p2) target bundleno = 210 (0xd2), region = 50 }
  0x25   : > { %s1118_s27 = smov 0   ;;  %s1120_s28 = smov 0  }
  0x26   : > { %s1122_s29 = smov -1.0   ;;  %s1124_s30 = smov 1.0  }
  0x27   : > { %s1130_s4 = smov 0   ;;  %s1132_s5 = smov 0  }
  0x28   : > { %s1134_s6 = smov 0   ;;  %s1136_s7 = smov 0  }
  0x29 LB: >> { %s1667_s1 = sld [smem:[#allocation16_spill]]  ;;  %s132_s8 = ssub.s32 %s1061_s7, %s1057_s6  ;;  %s1025_s27 = sphi %s1118_s27, %s1710_s27   ;;  %s1061_s7 = sphi %s1136_s7, %s1716_s7   ;;  %s1057_s6 = sphi %s1134_s6, %s1707_s6   ;;  %s1053_s5 = sphi %s1132_s5, %s1715_s5   ;;  %s1049_s4 = sphi %s1130_s4, %s1714_s4   ;;  %s1045_s24 = sphi %s786_s24, %s1713_s24   ;;  %s1041_s25 = sphi %s61_s25, %s1712_s25   ;;  %s1037_s30 = sphi %s1124_s30, %s1745_s30   ;;  %s1033_s29 = sphi %s1122_s29, %s1751_s29   ;;  %s1029_s28 = sphi %s1120_s28, %s1711_s28  }
  0x2a   : >> { %s1668_s0 = sld [smem:[#allocation17_spill]]  ;;  %s133_s9 = sadd.s32 1, %s132_s8 }
  0x2b   : >> { %1669 = sst [smem:[#allocation19_spill]] %s1029_s28  ;;  %s134_s10 = scvt.s32.f32 %s133_s9 }
  0x2c   : >> { %s1174_s12 = sadd.s32 1, %s1061_s7  ;;  %p101_p4 = scmp.lt.f32.partialorder %s1037_s30, 0.0 }
  0x2d   : >> { %v135_v3 = vstv %s134_s10  ;;  %p107_p10 = scmp.gt.f32.partialorder %s1033_s29, 0.0  ;;  %p128_p0 = scmp.gt.s32.totalorder %s1057_s6, %s1053_s5 }
  0x2e   : >> { %912 = vrcp.f32 %v135_v3  ;;  %p104_p6 = pneg %p101_p4  ;;  %v147_v6 = vand.u32 2147483648, %v135_v3  ;;  %vm141_vm1 = vweird.f32 %v135_v3  ;;  %v145_v8 = vand.u32 2147483647, %v135_v3 }
  0x2f   : >> { %p110_p12 = pneg %p107_p10 }
  0x30   : >> { %s1171_s11 = sadd.s32 4294967295, %s1668_s0  ;;  %v148_v10 = vor.u32 1.1754944e-38, %v147_v6  ;;  %vm146_vm4 = vcmp.eq.f32.partialorder %v145_v8, 8.507059e+37 }
  0x31   : >> { %p85_p3 = scmp.lt.s32.totalorder %s1174_s12, %s1171_s11  ;;  %p83_p5 = scmp.eq.s32.totalorder %s1061_s7, %s1171_s11 }
  0x32   : >> { %s129_s9 = scalar_select %p128_p0, %s1057_s6, %s1053_s5 }
  0x33   : >> { %s86_s13 = scalar_select %p85_p3, %s1174_s12, %s1171_s11 }
  0x34   : >> { %v913_v4 = vpop.eup %912  ;;  %p1188_p8 = pnand %p104_p6, %p83_p5  ;;  %p1201_p11 = pnand %p101_p4, %p83_p5 }
  0x35   : >> { %v137_v5 = vmul.f32 %v913_v4, %v135_v3  ;;  %p87_p7 = scmp.gt.s32.totalorder %s86_s13, 0  ;;  %vm142_vm2 = vweird.f32 %v913_v4  ;;  %p113_p5 = scmp.ne.s32.totalorder %s1061_s7, %s1171_s11 }
  0x36   : >> { %p106_p9 = pneg %p1188_p8  ;;  %vm143_vm3 = vmor %vm141_vm1, %vm142_vm2  ;;  %p1646_p2 = pneg %p1201_p11 }
  0x37   : >> { %v138_v7 = vsub.f32 1.0, %v137_v5  ;;  %s1723_s13 = smov (!%p87_p7, %s86_s13), 0 }
  0x38   : >> { %s89_s15 = sshra.s32 %s1723_s13, 7  ;;  %s94_s16 = sand.u32 127, %s1723_s13 }
  0x39   : >> { %v139_v9 = vmul.f32 %v913_v4, %v138_v7  ;;  %s91_s17 = sadd.s32 %s1667_s1, %s89_s15  ;;  %p1212_p13 = pnand %p107_p10, %p106_p9 }
  0x3a   : >> { %s790_s18 = sshll.u32 %s91_s17, 7  ;;  %p1225_p4 = pnand %p110_p12, %p106_p9 }
  0x3b   : >> { %v140_v11 = vadd.f32 %v913_v4, %v139_v9  ;;  %s1671_s19 = scalar_select %p1201_p11, 1, 0 }
  0x3c   : >> { %s95_s20 = sadd.s32 %s790_s18, %s94_s16  ;;  %p1645_p3 = pneg %p1212_p13 }
  0x3d   : >> { %v144_v12 = vsel %vm143_vm3, %v913_v4, %v140_v11  ;;  %s96_s21 = sld [smem:[#allocation2 + %s95_s20]]  ;;  %p112_p6 = pneg %p1225_p4 }
  0x3e   : >> { %v149_v13 = vsel %vm146_vm4, %v148_v10, %v144_v12  ;;  %s1672_s22 = scalar_select %p1212_p13, 1, 0 }
  0x3f   : >> { %813 = vpush %v149_v13  ;;  %s1673_s8 = scalar_select %p1225_p4, 1, 0 }
  0x40   : >> { %p1249_p7 = por %p1645_p3, %p1646_p2  ;;  %p130_p10 = scmp.gt.s32.totalorder %s1057_s6, %s1049_s4 }
  0x42   : >> { %s1674_s16 = scalar_select %p1249_p7, 1, 0 }
  0x43   : >> { %s97_s10 = sadd.f32 %s1037_s30, %s96_s21  ;;  %p158_p3 = por %p1249_p7, %p112_p6 }
  0x44   : >> { %s99_s13 = sadd.f32 %s1033_s29, %s96_s21 }
  0x45   : >> { %s1236_s15 = ssub.f32 %s97_s10, %s1045_s24 }
  0x46   : >> { %s1241_s14 = ssub.f32 %s99_s13, %s1041_s25 }
  0x47   : >> { %p114_p8 = scmp.lt.f32.partialorder %s1236_s15, -1.0 }
  0x48   : >> { %p120_p9 = scmp.gt.f32.partialorder %s1241_s14, 1.0 }
  0x49   : >> { %p1260_p12 = pnand %p114_p8, %p113_p5  ;;  %p117_p0 = pneg %p114_p8 }
  0x4a   : >> { %p123_p1 = pneg %p120_p9  ;;  %p1676_p8 = pneg %p1201_p11 }
  0x4b   : >> { %p1656_p2 = pneg %p1260_p12  ;;  %p118_p4 = pnand %p117_p0, %p113_p5 }
  0x4c   : >> { %s131_s18 = scalar_select %p130_p10, %s1057_s6, %s1049_s4 }
  0x4d   : >> { %p119_p13 = pneg %p118_p4  ;;  %p1279_p6 = por %p1656_p2, %p1676_p8 }
  0x4e   : >> { %p1286_p7 = por %p158_p3, %p1656_p2  ;;  %p1686_p8 = scmp.ne.s32.totalorder %s1673_s8, 0 }
  0x4f   : >> { %p1290_p5 = pnand %p120_p9, %p119_p13  ;;  %p1294_p4 = pnand %p123_p1, %p119_p13 }
  0x50   : >> { %s1725_s9 = smov (!%p1279_p6, %s129_s9), %s131_s18  ;;  %p1683_p9 = scmp.ne.s32.totalorder %s1672_s22, 0 }
  0x51   : >> { %s1679_s10 = scalar_select %p1290_p5, 1, 0 }
  0x52   : >> { %p1300_p10 = pneg %p1290_p5  ;;  %p125_p3 = pneg %p1294_p4 }
  0x53   : >> { %1680 = sst [smem:[#allocation20_spill]] %s1679_s10  ;;  %p1684_p0 = pneg %p1683_p9 }
  0x54   : >> { %p160_p13 = por %p1286_p7, %p1300_p10 }
  0x55   : >> { %p1315_p1 = por %p1300_p10, %p1684_p0  ;;  %v164_v14 = vstv (%p160_p13), %s1057_s6  ;;  %s169_s18 = scalar_lea.vmem (%p160_p13), [#allocation3], %s1667_s1  ;;  %vm173_vm7 = vcmask (%p160_p13), 57344  }
  0x56   : >> { %s792_s2 = scalar_select %p1686_p8, %s1725_s9, %s1061_s7  ;;  %vm165_vm5 = vcmp.ge.s32.totalorder (%p160_p13), %v1098_v2, %v164_v14  ;;  %v170_v17 = vld [vmem:[%s169_s18] sm:$0x1] (%p160_p13) }
  0x57   : >> { %s1685_s3 = scalar_select %p1315_p1, 1, 0 }
  0x58   : >> { %s153_s0 = scalar_select %p1279_p6, %s1045_s24, %s1041_s25  ;;  %v166_v15 = vstv (%p160_p13), %s792_s2 }
  0x59   : >> { %vm167_vm6 = vcmp.le.s32.totalorder (%p160_p13), %v1098_v2, %v166_v15 }
  0x5a   : >> { %vm168_vm8 = vmand (%p160_p13), %vm165_vm5, %vm167_vm6 }
  0x70   : >> { %s814_s23 = spop %813 }
  0x71   : >> { %s151_s10 = smul.f32 %s1037_s30, %s814_s23 }
  0x72   : >> { %163 = sbr.rel (!%p160_p13) target bundleno = 121 (0x79), region = 35 }
  0x73   : >> { %s152_s28 = sadd.f32 %s1045_s24, %s151_s10 }
  0x75   : >> { %s1727_s0 = smov (!%p1686_p8, %s153_s0), %s152_s28 }
  0x76   : >> { %v171_v16 = vstv (%p160_p13), %s1727_s0 }
  0x77   : >> { %v172_v18 = vsel %vm168_vm8, %v171_v16, %v170_v17 }
  0x78   : >> { %174 = vst.msk [vmem:[%s169_s18] sm:$0x1] %vm173_vm7, %v172_v18 }
  0x79 PF: >> { %s206_s2 = ssub.s32 %s1174_s12, %s1057_s6  ;;  %p1687_p7 = scmp.ne.s32.totalorder %s1674_s16, 0 }
  0x7a   : >> { %s207_s0 = sadd.s32 1, %s206_s2  ;;  %s177_s23 = sadd.s32 1, %s1725_s9 }
  0x7b   : >> { %p175_p9 = por %p1687_p7, %p1656_p2  ;;  %s208_s28 = scvt.s32.f32 %s207_s0 }
  0x7c   : >> { %s1729_s7 = smov (!%p1294_p4, %s1061_s7), %s1174_s12  ;;  %p194_p7 = scmp.ge.f32.partialorder %s1236_s15, 1.0 }
  0x7d   : >> { %p176_p0 = por %p175_p9, %p1300_p10  ;;  %v211_v19 = vstv %s208_s28  ;;  %p1691_p2 = scmp.ne.s32.totalorder %s1672_s22, 0 }
  0x7e   : >> { %914 = vrcp.f32 %v211_v19  ;;  %p1370_p9 = pnand %p194_p7, %p125_p3  ;;  %p1693_p5 = pneg %p1260_p12  ;;  %v223_v22 = vand.u32 2147483648, %v211_v19  ;;  %vm217_vm9 = vweird.f32 %v211_v19  ;;  %v221_v24 = vand.u32 2147483647, %v211_v19 }
  0x7f   : >> { %s1354_s21 = scalar_select %p176_p0, %s177_s23, %s1057_s6  }
  0x80   : >> { %s1731_s23 = smov (!%p176_p0, %s177_s23), %s1729_s7  ;;  %p1692_p1 = pneg %p1691_p2  ;;  %v224_v26 = vor.u32 1.1754944e-38, %v223_v22  ;;  %vm222_vm12 = vcmp.eq.f32.partialorder %v221_v24, 8.507059e+37 }
  0x81   : >> { %1688 = sst [smem:[#allocation21_spill]] %s1354_s21  ;;  %p179_p13 = scmp.lt.s32.totalorder %s1354_s21, %s1171_s11 }
  0x82   : >> { %1689 = sst [smem:[#allocation22_spill]] %s1731_s23  ;;  %p1380_p0 = por %p1693_p5, %p1692_p1 }
  0x83   : >> { %s180_s9 = scalar_select %p179_p13, %s1354_s21, %s1171_s11 }
  0x84   : >> { %p201_p8 = scmp.le.f32.partialorder %s1241_s14, -1.0  ;;  %v915_v20 = vpop.eup %914  ;;  %s1733_s5 = smov (!%p1370_p9, %s1053_s5), %s1174_s12 }
  0x85   : >> { %p181_p11 = scmp.gt.s32.totalorder %s180_s9, 0  ;;  %v213_v21 = vmul.f32 %v915_v20, %v211_v19  ;;  %p1695_p13 = por %p1279_p6, %p1300_p10  ;;  %vm218_vm10 = vweird.f32 %v915_v20 }
  0x86   : >> { %vm219_vm11 = vmor %vm217_vm9, %vm218_vm10  ;;  %p1407_p5 = pnand %p201_p8, %p125_p3  ;;  %s1067_s23 = smov -1.0  }
  0x87   : >> { %s1735_s9 = smov (!%p181_p11, %s180_s9), 0  ;;  %v214_v23 = vsub.f32 1.0, %v213_v21  ;;  %p200_p11 = por %p1380_p0, %p1300_p10 }
  0x88   : >> { %s1395_s7 = scalar_select %p1695_p13, %s1354_s21, %s1733_s5  }
  0x89   : >> { %s183_s11 = sshra.s32 %s1735_s9, 7  ;;  %s188_s10 = sand.u32 127, %s1735_s9  ;;  %v215_v25 = vmul.f32 %v915_v20, %v214_v23 }
  0x8a   : >> { %s185_s18 = sadd.s32 %s1667_s1, %s183_s11  ;;  %s1737_s4 = smov (!%p1407_p5, %s1049_s4), %s1174_s12 }
  0x8b   : >> { %s793_s2 = sshll.u32 %s185_s18, 7  ;;  %v216_v27 = vadd.f32 %v915_v20, %v215_v25  ;;  %s1697_s11 = sld [smem:[#allocation19_spill]] }
  0x8c   : >> { %s189_s5 = sadd.s32 %s793_s2, %s188_s10  ;;  %s1066_s10 = smov 1.0  }
  0x8d   : >> { %s1411_s28 = sld [smem:[#allocation2 + %s189_s5]]  ;;  %v220_v28 = vsel %vm219_vm11, %v915_v20, %v216_v27  ;;  %s257_s12 = smin.f32 %s1066_s10, %s1236_s15 }
  0x8e   : >> { %v225_v29 = vsel %vm222_vm12, %v224_v26, %v220_v28  ;;  %s1423_s9 = scalar_select %p200_p11, %s1354_s21, %s1737_s4  }
  0x8f   : >> { %815 = vpush %v225_v29  ;;  %s268_s18 = sadd.s32 1, %s1025_s27   ;;  %s1739_s30 = smov (!%p1294_p4, %s1037_s30), %s257_s12 }
  0x90   : >> { %s263_s4 = smax.f32 %s1067_s23, %s1241_s14  ;;  %p1698_p3 = pmov %p1695_p13 }
  0x91   : >> { %s1743_s29 = smov (!%p1294_p4, %s1033_s29), %s263_s4  ;;  %s1699_s10 = sld [smem:[#allocation20_spill]] }
  0x92   : >> { %p1700_p1 = scmp.ne.s32.totalorder %s1671_s19, 0  ;;  %p1701_p8 = scmp.ne.s32.totalorder %s1673_s8, 0 }
  0x93   : >> { %s803_s2 = sadd.f32 -1.0, %s1411_s28  ;;  %p1703_p4 = scmp.ne.s32.totalorder %s1685_s3, 0 }
  0x94   : >> { %s261_s5 = sadd.f32 1.0, %s1411_s28  ;;  %s1749_s11 = smov (!%p1701_p8, %s1697_s11), 1 }
  0x95   : >> { %s256_s1 = ssub.f32 %s803_s2, %s1045_s24  ;;  %p73_p10 = scmp.eq.s32.totalorder %s1749_s11, 0 }
  0x96   : >> { %s262_s21 = ssub.f32 %s261_s5, %s1041_s25  ;;  %s1710_s27 = smov %s268_s18 }
  0x97   : >> { %s1741_s30 = smov (!%p1691_p2, %s1739_s30), %s256_s1  ;;  %s798_s1 = sadd.f32 -1.0, %s1236_s15 }
  0x98   : >> { %s1745_s30 = smov (%p1698_p3, %s1741_s30), 1.0  ;;  %s1747_s29 = smov (!%p1700_p1, %s1743_s29), %s262_s21 }
  0x99   : >> { %s1751_s29 = smov (%p200_p11, %s1747_s29), -1.0  ;;  %s233_s22 = sadd.f32 1.0, %s1241_s14 }
  0x9a   : >> { %s797_s23 = sadd.f32 -2.0, %s1411_s28  ;;  %p1702_p2 = scmp.ne.s32.totalorder %s1699_s10, 0 }
  0x9b   : >> { %s232_s2 = sadd.f32 2.0, %s1411_s28 }
  0x9c   : >> { %s1704_s15 = sld [smem:[#allocation18_spill]] }
  0x9d   : >> { %s1706_s21 = sld [smem:[#allocation17_spill]] }
  0x9e   : >> { %s1707_s6 = sld [smem:[#allocation21_spill]] }
  0x9f   : >> { %s1708_s16 = sld [smem:[#allocation22_spill]] }
  0xa2   : >> { %s1705_s14 = sadd.s32 2, %s1704_s15 }
  0xa3   : >> { %p74_p7 = scmp.lt.s32.totalorder %s268_s18, %s1705_s14  ;;  %p1709_p13 = scmp.gt.s32.totalorder %s1706_s21, 0 }
  0xc0   : >> { %s816_s13 = spop %815 }
  0xc1   : >> { %s227_s12 = smul.f32 %s816_s13, %s798_s1 }
  0xc2   : >> { %s250_s5 = smul.f32 %s816_s13, %s233_s22 }
  0xc3   : >> { %s228_s19 = sadd.f32 %s1045_s24, %s227_s12 }
  0xc4   : >> { %s251_s4 = sadd.f32 %s1041_s25, %s250_s5  ;;  %s1715_s5 = smov %s1395_s7 }
  0xc5   : >> { %s1753_s24 = smov (!%p1370_p9, %s1045_s24), %s228_s19  ;;  %p75_p9 = pnand %p74_p7, %p73_p10 }
  0xc6   : >> { %s1755_s25 = smov (!%p1407_p5, %s1041_s25), %s251_s4  ;;  %s1757_s24 = smov (!%p1702_p2, %s1753_s24), %s797_s23 }
  0xc7   : >> { %s1759_s25 = smov (!%p1260_p12, %s1755_s25), %s232_s2  ;;  %p76_p0 = pneg %p75_p9 }
  0xc8   : >> { %s231_s26 = scalar_select %p1279_p6, %s1411_s28, %s1757_s24  }
  0xc9   : >> { %s254_s8 = scalar_select %p1703_p4, %s1411_s28, %s1759_s25  }
  0xca   : >> { %p78_p12 = pnand %p1709_p13, %p76_p0  ;;  %s1711_s28 = smov %s1749_s11 }
  0xcb   : >> { %s1712_s25 = smov %s254_s8  ;;  %s1713_s24 = smov %s231_s26 }
  0xcc   : >> { %s1714_s4 = smov %s1423_s9  ;;  %s1716_s7 = smov %s1708_s16 }
  0xcd   : > { %81 = sbr.rel (!%p78_p12) target bundleno = 41 (0x29), region = 56 }
  0xd2 PF: > { %s1717_s3 = sld [smem:[#allocation16_spill]] }
  0xd8   : > { %s52_s1 = sadd.s32 1, %s1717_s3  }
  0xd9   : > { %p49_p6 = scmp.ge.s32.totalorder %s52_s1, 8  }
  0xda   :  { %s1718_s0 = sld [smem:[#allocation23_spill]] (%p49_p6)  ;;  %v1068_v31 = vmov (%p49_p6), 0   ;;  %v1515_v32 = vld [vmem:[#allocation3] sm:$0xff] (%p49_p6)  ;;  %s1069_s24 = smov (%p49_p6), [#allocation8]  }
  0xdb   :  { %51 = sbr.rel (!%p49_p6) target bundleno = 17 (0x11), region = 67  ;;  %916 = vset.pattern.permute.xlu0 (%p49_p6), %v1068_v31  ;;  %917 = vset.pattern.permute.xlu1 (%p49_p6), %v1068_v31  ;;  %s724_s25 = sshll.u32 (%p49_p6), %s1069_s24, 4  ;;  %s725_s25 = int_to_ptr.vmem [resolvable:$true] %s724_s25 }
  0xdc   :  { %918 = vset.pattern.permute.xlu2 (%p49_p6), %v1068_v31  ;;  %s1721_s30 = sld [smem:[#allocation24_spill]] (%p49_p6) }
  0xe0   :  { %v270_v30 = vld [vmem:[%s1718_s0] sm:$0xff] }
  0xe1   :  { %272 = vperm.xlu0 %916, %v270_v30   ;;  %vm279_vm14 = vcmp.gt.s32.totalorder %v270_v30, 0 }
  0xe2   :  { %s726_s6 = sshll.u32 %s1721_s30, 4  ;;  %s727_s6 = int_to_ptr.hbm [resolvable:$true] %s726_s6 }
 0x153   :  { %v273_v33 = vpop.permute.xlu0 %272 }
 0x154   :  { %vm1518_vm13 = vcmp.lt.s32.totalorder %v1098_v2, %v273_v33 }
 0x155   :  { %v275_v35 = vsel %vm1518_vm13, %v1515_v32, -3e+38 }
 0x156   :  { %v276_v36 = vsel %vm43_vm0, %v275_v35, -inf }
 0x157   :  { %277 = vmax.xlane.f32.xlu0 %v276_v36 }
 0x1ca   :  { %v278_v37 = vpop.xlane.xlu0 %277 }
 0x1cb   :  { %v280_v38 = vsel %vm279_vm14, %v278_v37, 0.0 }
 0x1cc   :  { %v809_v39 = vadd.f32 -1.0, %v280_v38 }
 0x1ce   :  { %v282_v40 = vadd.f32 %v809_v39, %v280_v38 }
 0x1d0   :  { %v283_v41 = vmul.f32 0.5, %v282_v40 }
 0x1d2   :  { %286 = vperm.xlu1 %917, %v283_v41  }
 0x244   :  { %v287_v42 = vpop.permute.xlu1 %286 }
 0x245   :  { %v289_v43 = vsub.f32 %v1515_v32, %v287_v42 }
 0x247   :  { %v290_v44 = vmax.f32 %v289_v43, 0.0 }
 0x249   :  { %v291_v45 = vsel %vm1518_vm13, %v290_v44, 0.0 }
 0x24a   :  { %v292_v46 = vsel %vm43_vm0, %v291_v45, 0.0 }
 0x24b   :  { %293 = vadd.xlane.f32.xlu1 %v292_v46 }
 0x2be   :  { %v294_v47 = vpop.xlane.xlu1 %293 }
 0x2bf   :  { %vm295_vm15 = vcmp.ge.f32.partialorder %v294_v47, 1.0 }
 0x2c0   :  { %v296_v48 = vsel %vm295_vm15, %v283_v41, %v809_v39  ;;  %v297_v49 = vsel %vm295_vm15, %v280_v38, %v283_v41 }
 0x2c1   :  { %v298_v50 = vadd.f32 %v297_v49, %v296_v48 }
 0x2c3   :  { %v299_v51 = vmul.f32 0.5, %v298_v50 }
 0x2c5   :  { %302 = vperm.xlu2 %918, %v299_v51  }
 0x31f   :  { %v303_v52 = vpop.permute.xlu2 %302 }
 0x320   :  { %v305_v53 = vsub.f32 %v1515_v32, %v303_v52 }
 0x322   :  { %v306_v54 = vmax.f32 %v305_v53, 0.0 }
 0x324   :  { %v307_v55 = vsel %vm1518_vm13, %v306_v54, 0.0 }
 0x325   :  { %v308_v56 = vsel %vm43_vm0, %v307_v55, 0.0 }
 0x326   :  { %309 = vadd.xlane.f32.xlu2 %v308_v56 }
 0x399   :  { %v310_v57 = vpop.xlane.xlu2 %309 }
 0x39a   :  { %vm311_vm1 = vcmp.ge.f32.partialorder %v310_v57, 1.0 }
 0x39b   :  { %v312_v58 = vsel %vm311_vm1, %v299_v51, %v296_v48  ;;  %v313_v59 = vsel %vm311_vm1, %v297_v49, %v299_v51 }
 0x39c   :  { %v314_v60 = vadd.f32 %v313_v59, %v312_v58 }
 0x39e   :  { %v315_v61 = vmul.f32 0.5, %v314_v60 }
 0x3a0   :  { %318 = vperm.xlu2 %918, %v315_v61  }
 0x3fa   :  { %v319_v62 = vpop.permute.xlu2 %318 }
 0x3fb   :  { %v321_v63 = vsub.f32 %v1515_v32, %v319_v62 }
 0x3fd   :  { %v322_v0 = vmax.f32 %v321_v63, 0.0 }
 0x3ff   :  { %v323_v2 = vsel %vm1518_vm13, %v322_v0, 0.0 }
 0x400   :  { %v324_v3 = vsel %vm43_vm0, %v323_v2, 0.0 }
 0x401   :  { %325 = vadd.xlane.f32.xlu0 %v324_v3 }
 0x474   :  { %v326_v4 = vpop.xlane.xlu0 %325 }
 0x475   :  { %vm327_vm2 = vcmp.ge.f32.partialorder %v326_v4, 1.0 }
 0x476   :  { %v328_v5 = vsel %vm327_vm2, %v315_v61, %v312_v58  ;;  %v329_v6 = vsel %vm327_vm2, %v313_v59, %v315_v61 }
 0x477   :  { %v330_v7 = vadd.f32 %v329_v6, %v328_v5 }
 0x479   :  { %v331_v8 = vmul.f32 0.5, %v330_v7 }
 0x47b   :  { %334 = vperm.xlu1 %917, %v331_v8  }
 0x4ed   :  { %v335_v9 = vpop.permute.xlu1 %334 }
 0x4ee   :  { %v337_v10 = vsub.f32 %v1515_v32, %v335_v9 }
 0x4f0   :  { %v338_v11 = vmax.f32 %v337_v10, 0.0 }
 0x4f2   :  { %v339_v12 = vsel %vm1518_vm13, %v338_v11, 0.0 }
 0x4f3   :  { %v340_v13 = vsel %vm43_vm0, %v339_v12, 0.0 }
 0x4f4   :  { %341 = vadd.xlane.f32.xlu0 %v340_v13 }
 0x567   :  { %v342_v14 = vpop.xlane.xlu0 %341 }
 0x568   :  { %vm343_vm3 = vcmp.ge.f32.partialorder %v342_v14, 1.0 }
 0x569   :  { %v344_v15 = vsel %vm343_vm3, %v331_v8, %v328_v5  ;;  %v345_v16 = vsel %vm343_vm3, %v329_v6, %v331_v8 }
 0x56a   :  { %v346_v17 = vadd.f32 %v345_v16, %v344_v15 }
 0x56c   :  { %v347_v18 = vmul.f32 0.5, %v346_v17 }
 0x56e   :  { %350 = vperm.xlu0 %916, %v347_v18  }
 0x5e0   :  { %v351_v19 = vpop.permute.xlu0 %350 }
 0x5e1   :  { %v353_v20 = vsub.f32 %v1515_v32, %v351_v19 }
 0x5e3   :  { %v354_v21 = vmax.f32 %v353_v20, 0.0 }
 0x5e5   :  { %v355_v22 = vsel %vm1518_vm13, %v354_v21, 0.0 }
 0x5e6   :  { %v356_v23 = vsel %vm43_vm0, %v355_v22, 0.0 }
 0x5e7   :  { %357 = vadd.xlane.f32.xlu2 %v356_v23 }
 0x65a   :  { %v358_v24 = vpop.xlane.xlu2 %357 }
 0x65b   :  { %vm359_vm4 = vcmp.ge.f32.partialorder %v358_v24, 1.0 }
 0x65c   :  { %v360_v25 = vsel %vm359_vm4, %v347_v18, %v344_v15  ;;  %v361_v26 = vsel %vm359_vm4, %v345_v16, %v347_v18 }
 0x65d   :  { %v362_v27 = vadd.f32 %v361_v26, %v360_v25 }
 0x65f   :  { %v363_v28 = vmul.f32 0.5, %v362_v27 }
 0x661   :  { %366 = vperm.xlu1 %917, %v363_v28  }
 0x6d3   :  { %v367_v29 = vpop.permute.xlu1 %366 }
 0x6d4   :  { %v369_v30 = vsub.f32 %v1515_v32, %v367_v29 }
 0x6d6   :  { %v370_v31 = vmax.f32 %v369_v30, 0.0 }
 0x6d8   :  { %v371_v33 = vsel %vm1518_vm13, %v370_v31, 0.0 }
 0x6d9   :  { %v372_v35 = vsel %vm43_vm0, %v371_v33, 0.0 }
 0x6da   :  { %373 = vadd.xlane.f32.xlu1 %v372_v35 }
 0x74d   :  { %v374_v36 = vpop.xlane.xlu1 %373 }
 0x74e   :  { %vm375_vm5 = vcmp.ge.f32.partialorder %v374_v36, 1.0 }
 0x74f   :  { %v376_v37 = vsel %vm375_vm5, %v363_v28, %v360_v25  ;;  %v377_v38 = vsel %vm375_vm5, %v361_v26, %v363_v28 }
 0x750   :  { %v378_v39 = vadd.f32 %v377_v38, %v376_v37 }
 0x752   :  { %v379_v40 = vmul.f32 0.5, %v378_v39 }
 0x754   :  { %382 = vperm.xlu0 %916, %v379_v40  }
 0x7c6   :  { %v383_v41 = vpop.permute.xlu0 %382 }
 0x7c7   :  { %v385_v42 = vsub.f32 %v1515_v32, %v383_v41 }
 0x7c9   :  { %v386_v43 = vmax.f32 %v385_v42, 0.0 }
 0x7cb   :  { %v387_v44 = vsel %vm1518_vm13, %v386_v43, 0.0 }
 0x7cc   :  { %v388_v45 = vsel %vm43_vm0, %v387_v44, 0.0 }
 0x7cd   :  { %389 = vadd.xlane.f32.xlu0 %v388_v45 }
 0x840   :  { %v390_v46 = vpop.xlane.xlu0 %389 }
 0x841   :  { %vm391_vm6 = vcmp.ge.f32.partialorder %v390_v46, 1.0 }
 0x842   :  { %v392_v47 = vsel %vm391_vm6, %v379_v40, %v376_v37  ;;  %v393_v48 = vsel %vm391_vm6, %v377_v38, %v379_v40 }
 0x843   :  { %v394_v49 = vadd.f32 %v393_v48, %v392_v47 }
 0x845   :  { %v395_v50 = vmul.f32 0.5, %v394_v49 }
 0x847   :  { %398 = vperm.xlu2 %918, %v395_v50  }
 0x8a1   :  { %v399_v51 = vpop.permute.xlu2 %398 }
 0x8a2   :  { %v401_v52 = vsub.f32 %v1515_v32, %v399_v51 }
 0x8a4   :  { %v402_v53 = vmax.f32 %v401_v52, 0.0 }
 0x8a6   :  { %v403_v54 = vsel %vm1518_vm13, %v402_v53, 0.0 }
 0x8a7   :  { %v404_v55 = vsel %vm43_vm0, %v403_v54, 0.0 }
 0x8a8   :  { %405 = vadd.xlane.f32.xlu1 %v404_v55 }
 0x91b   :  { %v406_v56 = vpop.xlane.xlu1 %405 }
 0x91c   :  { %vm407_vm7 = vcmp.ge.f32.partialorder %v406_v56, 1.0 }
 0x91d   :  { %v408_v57 = vsel %vm407_vm7, %v395_v50, %v392_v47  ;;  %v409_v58 = vsel %vm407_vm7, %v393_v48, %v395_v50 }
 0x91e   :  { %v410_v59 = vadd.f32 %v409_v58, %v408_v57 }
 0x920   :  { %v411_v60 = vmul.f32 0.5, %v410_v59 }
 0x922   :  { %414 = vperm.xlu1 %917, %v411_v60  }
 0x994   :  { %v415_v61 = vpop.permute.xlu1 %414 }
 0x995   :  { %v417_v62 = vsub.f32 %v1515_v32, %v415_v61 }
 0x997   :  { %v418_v63 = vmax.f32 %v417_v62, 0.0 }
 0x999   :  { %v419_v0 = vsel %vm1518_vm13, %v418_v63, 0.0 }
 0x99a   :  { %v420_v2 = vsel %vm43_vm0, %v419_v0, 0.0 }
 0x99b   :  { %421 = vadd.xlane.f32.xlu0 %v420_v2 }
 0xa0e   :  { %v422_v3 = vpop.xlane.xlu0 %421 }
 0xa0f   :  { %vm423_vm8 = vcmp.ge.f32.partialorder %v422_v3, 1.0 }
 0xa10   :  { %v424_v4 = vsel %vm423_vm8, %v411_v60, %v408_v57  ;;  %v425_v5 = vsel %vm423_vm8, %v409_v58, %v411_v60 }
 0xa11   :  { %v426_v6 = vadd.f32 %v425_v5, %v424_v4 }
 0xa13   :  { %v427_v7 = vmul.f32 0.5, %v426_v6 }
 0xa15   :  { %430 = vperm.xlu2 %918, %v427_v7  }
 0xa6f   :  { %v431_v8 = vpop.permute.xlu2 %430 }
 0xa70   :  { %v433_v9 = vsub.f32 %v1515_v32, %v431_v8 }
 0xa72   :  { %v434_v10 = vmax.f32 %v433_v9, 0.0 }
 0xa74   :  { %v435_v11 = vsel %vm1518_vm13, %v434_v10, 0.0 }
 0xa75   :  { %v436_v12 = vsel %vm43_vm0, %v435_v11, 0.0 }
 0xa76   :  { %437 = vadd.xlane.f32.xlu0 %v436_v12 }
 0xae9   :  { %v438_v13 = vpop.xlane.xlu0 %437 }
 0xaea   :  { %vm439_vm9 = vcmp.ge.f32.partialorder %v438_v13, 1.0 }
 0xaeb   :  { %v440_v14 = vsel %vm439_vm9, %v427_v7, %v424_v4  ;;  %v441_v15 = vsel %vm439_vm9, %v425_v5, %v427_v7 }
 0xaec   :  { %v442_v16 = vadd.f32 %v441_v15, %v440_v14 }
 0xaee   :  { %v443_v17 = vmul.f32 0.5, %v442_v16 }
 0xaf0   :  { %446 = vperm.xlu2 %918, %v443_v17  }
 0xb4a   :  { %v447_v18 = vpop.permute.xlu2 %446 }
 0xb4b   :  { %v449_v19 = vsub.f32 %v1515_v32, %v447_v18 }
 0xb4d   :  { %v450_v20 = vmax.f32 %v449_v19, 0.0 }
 0xb4f   :  { %v451_v21 = vsel %vm1518_vm13, %v450_v20, 0.0 }
 0xb50   :  { %v452_v22 = vsel %vm43_vm0, %v451_v21, 0.0 }
 0xb51   :  { %453 = vadd.xlane.f32.xlu0 %v452_v22 }
 0xbc4   :  { %v454_v23 = vpop.xlane.xlu0 %453 }
 0xbc5   :  { %vm455_vm10 = vcmp.ge.f32.partialorder %v454_v23, 1.0 }
 0xbc6   :  { %v456_v24 = vsel %vm455_vm10, %v443_v17, %v440_v14  ;;  %v457_v25 = vsel %vm455_vm10, %v441_v15, %v443_v17 }
 0xbc7   :  { %v458_v26 = vadd.f32 %v457_v25, %v456_v24 }
 0xbc9   :  { %v459_v27 = vmul.f32 0.5, %v458_v26 }
 0xbcb   :  { %462 = vperm.xlu2 %918, %v459_v27  }
 0xc25   :  { %v463_v28 = vpop.permute.xlu2 %462 }
 0xc26   :  { %v465_v29 = vsub.f32 %v1515_v32, %v463_v28 }
 0xc28   :  { %v466_v30 = vmax.f32 %v465_v29, 0.0 }
 0xc2a   :  { %v467_v31 = vsel %vm1518_vm13, %v466_v30, 0.0 }
 0xc2b   :  { %v468_v33 = vsel %vm43_vm0, %v467_v31, 0.0 }
 0xc2c   :  { %469 = vadd.xlane.f32.xlu1 %v468_v33 }
 0xc9f   :  { %v470_v35 = vpop.xlane.xlu1 %469 }
 0xca0   :  { %vm471_vm11 = vcmp.ge.f32.partialorder %v470_v35, 1.0 }
 0xca1   :  { %v472_v36 = vsel %vm471_vm11, %v459_v27, %v456_v24  ;;  %v473_v37 = vsel %vm471_vm11, %v457_v25, %v459_v27 }
 0xca2   :  { %v474_v38 = vadd.f32 %v473_v37, %v472_v36 }
 0xca4   :  { %v475_v39 = vmul.f32 0.5, %v474_v38 }
 0xca6   :  { %478 = vperm.xlu0 %916, %v475_v39  }
 0xd18   :  { %v479_v40 = vpop.permute.xlu0 %478 }
 0xd19   :  { %v481_v41 = vsub.f32 %v1515_v32, %v479_v40 }
 0xd1b   :  { %v482_v42 = vmax.f32 %v481_v41, 0.0 }
 0xd1d   :  { %v483_v43 = vsel %vm1518_vm13, %v482_v42, 0.0 }
 0xd1e   :  { %v484_v44 = vsel %vm43_vm0, %v483_v43, 0.0 }
 0xd1f   :  { %485 = vadd.xlane.f32.xlu2 %v484_v44 }
 0xd92   :  { %v486_v45 = vpop.xlane.xlu2 %485 }
 0xd93   :  { %vm487_vm12 = vcmp.ge.f32.partialorder %v486_v45, 1.0 }
 0xd94   :  { %v488_v46 = vsel %vm487_vm12, %v475_v39, %v472_v36  ;;  %v489_v47 = vsel %vm487_vm12, %v473_v37, %v475_v39 }
 0xd95   :  { %v490_v48 = vadd.f32 %v489_v47, %v488_v46 }
 0xd97   :  { %v491_v49 = vmul.f32 0.5, %v490_v48 }
 0xd99   :  { %494 = vperm.xlu0 %916, %v491_v49  }
 0xe0b   :  { %v495_v50 = vpop.permute.xlu0 %494 }
 0xe0c   :  { %v497_v51 = vsub.f32 %v1515_v32, %v495_v50 }
 0xe0e   :  { %v498_v52 = vmax.f32 %v497_v51, 0.0 }
 0xe10   :  { %v499_v53 = vsel %vm1518_vm13, %v498_v52, 0.0 }
 0xe11   :  { %v500_v54 = vsel %vm43_vm0, %v499_v53, 0.0 }
 0xe12   :  { %501 = vadd.xlane.f32.xlu0 %v500_v54 }
 0xe85   :  { %v502_v55 = vpop.xlane.xlu0 %501 }
 0xe86   :  { %vm503_vm14 = vcmp.ge.f32.partialorder %v502_v55, 1.0 }
 0xe87   :  { %v504_v56 = vsel %vm503_vm14, %v491_v49, %v488_v46  ;;  %v505_v57 = vsel %vm503_vm14, %v489_v47, %v491_v49 }
 0xe88   :  { %v506_v58 = vadd.f32 %v505_v57, %v504_v56 }
 0xe8a   :  { %v507_v59 = vmul.f32 0.5, %v506_v58 }
 0xe8c   :  { %510 = vperm.xlu1 %917, %v507_v59  }
 0xefe   :  { %v511_v60 = vpop.permute.xlu1 %510 }
 0xeff   :  { %v513_v61 = vsub.f32 %v1515_v32, %v511_v60 }
 0xf01   :  { %v514_v62 = vmax.f32 %v513_v61, 0.0 }
 0xf03   :  { %v515_v63 = vsel %vm1518_vm13, %v514_v62, 0.0 }
 0xf04   :  { %v516_v0 = vsel %vm43_vm0, %v515_v63, 0.0 }
 0xf05   :  { %517 = vadd.xlane.f32.xlu2 %v516_v0 }
 0xf78   :  { %v518_v2 = vpop.xlane.xlu2 %517 }
 0xf79   :  { %vm519_vm15 = vcmp.ge.f32.partialorder %v518_v2, 1.0 }
 0xf7a   :  { %v520_v3 = vsel %vm519_vm15, %v507_v59, %v504_v56  ;;  %v521_v4 = vsel %vm519_vm15, %v505_v57, %v507_v59 }
 0xf7b   :  { %v522_v5 = vadd.f32 %v521_v4, %v520_v3 }
 0xf7d   :  { %v523_v6 = vmul.f32 0.5, %v522_v5 }
 0xf7f   :  { %526 = vperm.xlu2 %918, %v523_v6  }
 0xfd9   :  { %v527_v7 = vpop.permute.xlu2 %526 }
 0xfda   :  { %v529_v8 = vsub.f32 %v1515_v32, %v527_v7 }
 0xfdc   :  { %v530_v9 = vmax.f32 %v529_v8, 0.0 }
 0xfde   :  { %v531_v10 = vsel %vm1518_vm13, %v530_v9, 0.0 }
 0xfdf   :  { %v532_v11 = vsel %vm43_vm0, %v531_v10, 0.0 }
 0xfe0   :  { %533 = vadd.xlane.f32.xlu1 %v532_v11 }
0x1053   :  { %v534_v12 = vpop.xlane.xlu1 %533 }
0x1054   :  { %vm535_vm1 = vcmp.ge.f32.partialorder %v534_v12, 1.0 }
0x1055   :  { %v536_v13 = vsel %vm535_vm1, %v523_v6, %v520_v3  ;;  %v537_v14 = vsel %vm535_vm1, %v521_v4, %v523_v6 }
0x1056   :  { %v538_v15 = vadd.f32 %v537_v14, %v536_v13 }
0x1058   :  { %v539_v16 = vmul.f32 0.5, %v538_v15 }
0x105a   :  { %542 = vperm.xlu0 %916, %v539_v16  }
0x10cc   :  { %v543_v17 = vpop.permute.xlu0 %542 }
0x10cd   :  { %v545_v18 = vsub.f32 %v1515_v32, %v543_v17 }
0x10cf   :  { %v546_v19 = vmax.f32 %v545_v18, 0.0 }
0x10d1   :  { %v547_v20 = vsel %vm1518_vm13, %v546_v19, 0.0 }
0x10d2   :  { %v548_v21 = vsel %vm43_vm0, %v547_v20, 0.0 }
0x10d3   :  { %549 = vadd.xlane.f32.xlu2 %v548_v21 }
0x1146   :  { %v550_v22 = vpop.xlane.xlu2 %549 }
0x1147   :  { %vm551_vm2 = vcmp.ge.f32.partialorder %v550_v22, 1.0 }
0x1148   :  { %v552_v23 = vsel %vm551_vm2, %v539_v16, %v536_v13  ;;  %v553_v24 = vsel %vm551_vm2, %v537_v14, %v539_v16 }
0x1149   :  { %v554_v25 = vadd.f32 %v553_v24, %v552_v23 }
0x114b   :  { %v555_v26 = vmul.f32 0.5, %v554_v25 }
0x114d   :  { %558 = vperm.xlu0 %916, %v555_v26  }
0x11bf   :  { %v559_v27 = vpop.permute.xlu0 %558 }
0x11c0   :  { %v561_v28 = vsub.f32 %v1515_v32, %v559_v27 }
0x11c2   :  { %v562_v29 = vmax.f32 %v561_v28, 0.0 }
0x11c4   :  { %v563_v30 = vsel %vm1518_vm13, %v562_v29, 0.0 }
0x11c5   :  { %v564_v31 = vsel %vm43_vm0, %v563_v30, 0.0 }
0x11c6   :  { %565 = vadd.xlane.f32.xlu0 %v564_v31 }
0x1239   :  { %v566_v33 = vpop.xlane.xlu0 %565 }
0x123a   :  { %vm567_vm3 = vcmp.ge.f32.partialorder %v566_v33, 1.0 }
0x123b   :  { %v568_v35 = vsel %vm567_vm3, %v555_v26, %v552_v23  ;;  %v569_v36 = vsel %vm567_vm3, %v553_v24, %v555_v26 }
0x123c   :  { %v570_v37 = vadd.f32 %v569_v36, %v568_v35 }
0x123e   :  { %v571_v38 = vmul.f32 0.5, %v570_v37 }
0x1240   :  { %574 = vperm.xlu1 %917, %v571_v38  }
0x12b2   :  { %v575_v39 = vpop.permute.xlu1 %574 }
0x12b3   :  { %v577_v40 = vsub.f32 %v1515_v32, %v575_v39 }
0x12b5   :  { %v578_v41 = vmax.f32 %v577_v40, 0.0 }
0x12b7   :  { %v579_v42 = vsel %vm1518_vm13, %v578_v41, 0.0 }
0x12b8   :  { %v580_v43 = vsel %vm43_vm0, %v579_v42, 0.0 }
0x12b9   :  { %581 = vadd.xlane.f32.xlu2 %v580_v43 }
0x132c   :  { %v582_v44 = vpop.xlane.xlu2 %581 }
0x132d   :  { %vm583_vm4 = vcmp.ge.f32.partialorder %v582_v44, 1.0 }
0x132e   :  { %v584_v45 = vsel %vm583_vm4, %v571_v38, %v568_v35  ;;  %v585_v46 = vsel %vm583_vm4, %v569_v36, %v571_v38 }
0x132f   :  { %v586_v47 = vadd.f32 %v585_v46, %v584_v45 }
0x1331   :  { %v587_v48 = vmul.f32 0.5, %v586_v47 }
0x1333   :  { %590 = vperm.xlu2 %918, %v587_v48  }
0x138d   :  { %v591_v49 = vpop.permute.xlu2 %590 }
0x138e   :  { %v593_v50 = vsub.f32 %v1515_v32, %v591_v49 }
0x1390   :  { %v594_v51 = vmax.f32 %v593_v50, 0.0 }
0x1392   :  { %v595_v52 = vsel %vm1518_vm13, %v594_v51, 0.0 }
0x1393   :  { %v596_v53 = vsel %vm43_vm0, %v595_v52, 0.0 }
0x1394   :  { %597 = vadd.xlane.f32.xlu1 %v596_v53 }
0x1407   :  { %v598_v54 = vpop.xlane.xlu1 %597 }
0x1408   :  { %vm599_vm5 = vcmp.ge.f32.partialorder %v598_v54, 1.0 }
0x1409   :  { %v600_v55 = vsel %vm599_vm5, %v587_v48, %v584_v45  ;;  %v601_v56 = vsel %vm599_vm5, %v585_v46, %v587_v48 }
0x140a   :  { %v602_v57 = vadd.f32 %v601_v56, %v600_v55 }
0x140c   :  { %v603_v58 = vmul.f32 0.5, %v602_v57 }
0x140e   :  { %606 = vperm.xlu0 %916, %v603_v58  }
0x1480   :  { %v607_v59 = vpop.permute.xlu0 %606 }
0x1481   :  { %v609_v60 = vsub.f32 %v1515_v32, %v607_v59 }
0x1483   :  { %v610_v61 = vmax.f32 %v609_v60, 0.0 }
0x1485   :  { %v611_v62 = vsel %vm1518_vm13, %v610_v61, 0.0 }
0x1486   :  { %v612_v63 = vsel %vm43_vm0, %v611_v62, 0.0 }
0x1487   :  { %613 = vadd.xlane.f32.xlu2 %v612_v63 }
0x14fa   :  { %v614_v0 = vpop.xlane.xlu2 %613 }
0x14fb   :  { %vm615_vm6 = vcmp.ge.f32.partialorder %v614_v0, 1.0 }
0x14fc   :  { %v616_v2 = vsel %vm615_vm6, %v603_v58, %v600_v55  ;;  %v617_v3 = vsel %vm615_vm6, %v601_v56, %v603_v58 }
0x14fd   :  { %v618_v4 = vadd.f32 %v617_v3, %v616_v2 }
0x14ff   :  { %v619_v5 = vmul.f32 0.5, %v618_v4 }
0x1501   :  { %622 = vperm.xlu0 %916, %v619_v5  }
0x1573   :  { %v623_v6 = vpop.permute.xlu0 %622 }
0x1574   :  { %v625_v7 = vsub.f32 %v1515_v32, %v623_v6 }
0x1576   :  { %v626_v8 = vmax.f32 %v625_v7, 0.0 }
0x1578   :  { %v627_v9 = vsel %vm1518_vm13, %v626_v8, 0.0 }
0x1579   :  { %v628_v10 = vsel %vm43_vm0, %v627_v9, 0.0 }
0x157a   :  { %629 = vadd.xlane.f32.xlu0 %v628_v10 }
0x15ed   :  { %v630_v11 = vpop.xlane.xlu0 %629 }
0x15ee   :  { %vm631_vm7 = vcmp.ge.f32.partialorder %v630_v11, 1.0 }
0x15ef   :  { %v632_v12 = vsel %vm631_vm7, %v619_v5, %v616_v2  ;;  %v633_v13 = vsel %vm631_vm7, %v617_v3, %v619_v5 }
0x15f0   :  { %v634_v14 = vadd.f32 %v633_v13, %v632_v12 }
0x15f2   :  { %v635_v15 = vmul.f32 0.5, %v634_v14 }
0x15f4   :  { %638 = vperm.xlu1 %917, %v635_v15  }
0x1666   :  { %v639_v16 = vpop.permute.xlu1 %638 }
0x1667   :  { %v641_v17 = vsub.f32 %v1515_v32, %v639_v16 }
0x1669   :  { %v642_v18 = vmax.f32 %v641_v17, 0.0 }
0x166b   :  { %v643_v19 = vsel %vm1518_vm13, %v642_v18, 0.0 }
0x166c   :  { %v644_v20 = vsel %vm43_vm0, %v643_v19, 0.0 }
0x166d   :  { %645 = vadd.xlane.f32.xlu2 %v644_v20 }
0x16e0   :  { %v646_v21 = vpop.xlane.xlu2 %645 }
0x16e1   :  { %vm647_vm8 = vcmp.ge.f32.partialorder %v646_v21, 1.0 }
0x16e2   :  { %v648_v22 = vsel %vm647_vm8, %v635_v15, %v632_v12  ;;  %v649_v23 = vsel %vm647_vm8, %v633_v13, %v635_v15 }
0x16e3   :  { %v650_v24 = vadd.f32 %v649_v23, %v648_v22 }
0x16e5   :  { %v651_v25 = vmul.f32 0.5, %v650_v24 }
0x16e7   :  { %654 = vperm.xlu2 %918, %v651_v25  }
0x1741   :  { %v655_v26 = vpop.permute.xlu2 %654 }
0x1742   :  { %v657_v27 = vsub.f32 %v1515_v32, %v655_v26 }
0x1744   :  { %v658_v28 = vmax.f32 %v657_v27, 0.0 }
0x1746   :  { %v659_v29 = vsel %vm1518_vm13, %v658_v28, 0.0 }
0x1747   :  { %v660_v30 = vsel %vm43_vm0, %v659_v29, 0.0 }
0x1748   :  { %661 = vadd.xlane.f32.xlu1 %v660_v30 }
0x17bb   :  { %v662_v31 = vpop.xlane.xlu1 %661 }
0x17bc   :  { %vm663_vm9 = vcmp.ge.f32.partialorder %v662_v31, 1.0 }
0x17bd   :  { %v664_v33 = vsel %vm663_vm9, %v651_v25, %v648_v22  ;;  %v665_v35 = vsel %vm663_vm9, %v649_v23, %v651_v25 }
0x17be   :  { %v666_v36 = vadd.f32 %v665_v35, %v664_v33 }
0x17c0   :  { %v667_v37 = vmul.f32 0.5, %v666_v36 }
0x17c2   :  { %670 = vperm.xlu0 %916, %v667_v37  }
0x1834   :  { %v671_v38 = vpop.permute.xlu0 %670 }
0x1835   :  { %v673_v39 = vsub.f32 %v1515_v32, %v671_v38 }
0x1837   :  { %v674_v40 = vmax.f32 %v673_v39, 0.0 }
0x1839   :  { %v675_v41 = vsel %vm1518_vm13, %v674_v40, 0.0 }
0x183a   :  { %v676_v42 = vsel %vm43_vm0, %v675_v41, 0.0 }
0x183b   :  { %677 = vadd.xlane.f32.xlu2 %v676_v42 }
0x18ae   :  { %v678_v43 = vpop.xlane.xlu2 %677 }
0x18af   :  { %vm679_vm10 = vcmp.ge.f32.partialorder %v678_v43, 1.0 }
0x18b0   :  { %v680_v44 = vsel %vm679_vm10, %v667_v37, %v664_v33 }
0x18b1   :  { %683 = vperm.xlu0 %916, %v680_v44  }
0x1923   :  { %v684_v45 = vpop.permute.xlu0 %683 }
0x1924   :  { %vm686_vm11 = vcmp.gt.f32.partialorder %v1515_v32, %v684_v45 }
0x1925   :  { %vm687_vm12 = vmand %vm1518_vm13, %vm686_vm11 }
0x1926   :  { %v692_v46 = vsel %vm687_vm12, %v1515_v32, 0.0  ;;  %v688_v47 = vsel %vm687_vm12, 1.0, %v1065_v1 }
0x1927   :  { %v693_v48 = vsel %vm43_vm0, %v692_v46, 0.0  ;;  %v689_v49 = vsel %vm43_vm0, %v688_v47, 0.0 }
0x1928   :  { %694 = vadd.xlane.f32.xlu1 %v693_v48  ;;  %690 = vadd.xlane.f32.xlu0 %v689_v49 }
0x199b   :  { %v691_v50 = vpop.xlane.xlu0 %690  ;;  %v695_v58 = vpop.xlane.xlu1 %694 }
0x199c   :  { %v697_v51 = vmax.f32 %v691_v50, 1.0  ;;  %v810_v60 = vadd.f32 -1.0, %v695_v58  ;;  %vm713_vm3 = vcmp.gt.f32.partialorder %v691_v50, 0.0 }
0x199e   :  { %919 = vrcp.f32 %v697_v51  ;;  %v709_v55 = vand.u32 2147483648, %v697_v51  ;;  %v707_v57 = vand.u32 2147483647, %v697_v51  ;;  %vm703_vm15 = vweird.f32 %v697_v51 }
0x19a0   :  { %v710_v1 = vor.u32 1.1754944e-38, %v709_v55  ;;  %vm708_vm2 = vcmp.eq.f32.partialorder %v707_v57, 8.507059e+37 }
0x19a4   :  { %v920_v52 = vpop.eup %919 }
0x19a5   :  { %v699_v53 = vmul.f32 %v920_v52, %v697_v51  ;;  %vm704_vm14 = vweird.f32 %v920_v52 }
0x19a6   :  { %vm705_vm1 = vmor %vm703_vm15, %vm704_vm14 }
0x19a7   :  { %v700_v54 = vsub.f32 1.0, %v699_v53 }
0x19a9   :  { %v701_v56 = vmul.f32 %v920_v52, %v700_v54 }
0x19ab   :  { %v702_v59 = vadd.f32 %v920_v52, %v701_v56 }
0x19ad   :  { %v706_v61 = vsel %vm705_vm1, %v920_v52, %v702_v59 }
0x19ae   :  { %v711_v62 = vsel %vm708_vm2, %v710_v1, %v706_v61 }
0x19af   :  { %v712_v63 = vmul.f32 %v810_v60, %v711_v62 }
0x19b1   :  { %v714_v0 = vsel %vm713_vm3, %v712_v63, 0.0 }
0x19b2   :  { %v715_v2 = vsub.f32 %v1515_v32, %v714_v0 }
0x19b4   :  { %v716_v3 = vmax.f32 %v715_v2, 0.0 }
0x19b6   :  { %v717_v4 = vsel %vm1518_vm13, %v716_v3, 0.0 }
0x19b7   :  { %718 = vst.msk [vmem:[#allocation8] sm:$0xff] %vm43_vm0, %v717_v4 }
0x19b8   :  { %729 = dma.vmem_to_hbm [thread:$0]  %s725_s25, 128, %s727_s6, [#allocation6]  }
0x19b9   :  { %1017 = dma.done.wait [#allocation6], 128  }
0x19ba   :  { %1018 = vsyncadd [#allocation6], 4294967168 }
0x19bb   :  { %734 = vsyncpa [#allocation6], 1 }
0x19bc   :  { %735 = vsyncpa [#allocation7], 1 }
0x19bd   :  { %736 = vsyncmov [#allocation4] }
0x19c0   :  { %s737_s7 = vpop.sfrf %736 }
0x19c1   :  { %p811_p11 = scmp.ne.s32.totalorder %s737_s7, 0 }
0x19c3   :  { %741 = shalt.err (%p811_p11)  }

</bundles_post_ra>
